<compile_context>
chip_gen: v6e
topology: v6e:2x2x1
jax: 0.10.0
libtpu: 0.0.40
codegen_flags: <defaults>
</compile_context>

<pallas_src>
import functools

import jax
import jax.numpy as jnp
from jax.experimental import pallas as pl
from jax.experimental.pallas import tpu as pltpu

_LANE = 128
_MAX_ROW_TILE = 1024                 # rows per grid step (sweet spot per tile sweep)
_VMEM_LIMIT = 48 * 1024 * 1024       # <= v7x 64 MiB budget; plenty of slack on v5e/v6e


def _round_up(x, m):
    return (x + m - 1) // m * m


# ----------------------------- Pallas kernels -----------------------------

def _matmul_stats_kernel(p_ref, w_ref, y_ref, s_ref):
    """Row-tile matmul (bf16 in, f32 acc) -> bf16 pre-activation + (2,C) stats."""
    y = jnp.dot(p_ref[...], w_ref[...], preferred_element_type=jnp.float32)
    y_ref[...] = y.astype(y_ref.dtype)               # bf16 intermediate to HBM
    ssum = jnp.sum(y, axis=0, keepdims=True)          # (1, C)
    ssq = jnp.sum(y * y, axis=0, keepdims=True)       # (1, C)
    row = jax.lax.broadcasted_iota(jnp.int32, (2, y.shape[1]), 0)
    s_ref[...] = jnp.where(row == 0, ssum, ssq)       # row0 = sum, row1 = sum of sq


def _bn_lrelu_kernel(y_ref, stats_ref, gamma_ref, beta_ref, o_ref, *, inv_n, eps):
    """Fused BN (batch stats folded in-kernel from per-tile partials) + LeakyReLU."""
    tot = jnp.sum(stats_ref[...], axis=0)             # (2, C): [sum; sum_sq]
    mean = tot[0:1, :] * inv_n                         # (1, C)
    ex2 = tot[1:2, :] * inv_n
    var = jnp.maximum(ex2 - mean * mean, 0.0)
    scale = gamma_ref[...] * jax.lax.rsqrt(var + eps)  # gamma * rsqrt(var + eps)
    shift = beta_ref[...] - mean * scale
    y = y_ref[...].astype(jnp.float32) * scale + shift
    o_ref[...] = jnp.where(y > 0, y, 0.2 * y).astype(o_ref.dtype)


def _matmul_bias_sigmoid_kernel(p_ref, w_ref, b_ref, o_ref):
    """Final conv head: matmul + bias + sigmoid (C_out zero-padded to 128 lanes)."""
    y = jnp.dot(p_ref[...], w_ref[...], preferred_element_type=jnp.float32)
    o_ref[...] = jax.nn.sigmoid(y + b_ref[...])


# ----------------------------- host-side glue ------------------------------

def _im2col_nhwc(x, k, s, p):
    """(N,H,W,C) -> (N*OH*OW, k*k*C) with (kh, kw, c) column order, built with a
    single concatenate of strided slabs (no 6-D transpose relayout)."""
    N, H, W, C = x.shape
    xp = jnp.pad(x, ((0, 0), (p, p), (p, p), (0, 0)))
    OH = (H + 2 * p - k) // s + 1
    OW = (W + 2 * p - k) // s + 1
    slabs = [xp[:, kh:kh + s * OH:s, kw:kw + s * OW:s, :]       # (N, OH, OW, C) each
             for kh in range(k) for kw in range(k)]
    patches = jnp.concatenate(slabs, axis=-1)                   # (N, OH, OW, k*k*C)
    return patches.reshape(N * OH * OW, k * k * C), OH, OW


def _pack_weight(w, k_pad, c_pad):
    """(C_out,C_in,k,k) -> bf16 (K_pad, C_pad) matching the (kh, kw, c) patch order."""
    c_out, c_in, k, _ = w.shape
    wm = jnp.transpose(w, (2, 3, 1, 0)).reshape(k * k * c_in, c_out)
    wm = jnp.pad(wm, ((0, k_pad - k * k * c_in), (0, c_pad - c_out)))
    return wm.astype(jnp.bfloat16)


def _row_tiling(r):
    """Pick (tile_rows, padded_rows, num_tiles): waste bounded to <1 tile of
    cdiv(r, nt) rows, and an even tile count when nt > 1 (v7x megacore)."""
    r8 = _round_up(r, 8)
    if r8 <= _MAX_ROW_TILE:
        return r8, r8, 1
    nt = -(-r8 // _MAX_ROW_TILE)
    if nt % 2 == 1:
        nt += 1
    tr = _round_up(-(-r8 // nt), 8)
    return tr, tr * nt, nt


def _compiler_params():
    return pltpu.CompilerParams(
        dimension_semantics=("parallel",),
        vmem_limit_bytes=_VMEM_LIMIT,
    )


def conv_bn_lrelu(x_nhwc, w, gamma, beta, *, stride, pad, eps=1e-5):
    """Conv2d (bias dropped: cancelled by training-mode BN) + BatchNorm2d with
    batch statistics + LeakyReLU(0.2). NHWC in, NHWC bf16 out."""
    c_out, _, k, _ = w.shape
    n = x_nhwc.shape[0]
    patches, oh, ow = _im2col_nhwc(x_nhwc.astype(jnp.bfloat16), k, stride, pad)
    r, kk = patches.shape
    k_pad = _round_up(kk, _LANE)           # contraction dim (conv1: 48 -> 128)
    c_pad = _round_up(c_out, _LANE)        # lane-dense output channels
    tr, r_pad, nt = _row_tiling(r)

    patches = jnp.pad(patches, ((0, r_pad - r), (0, k_pad - kk)))
    wm = _pack_weight(w, k_pad, c_pad)

    # Pass 1: streamed row-tile matmul, resident weights; bf16 pre-activation
    # plus per-tile (sum, sum-of-squares) channel stats.
    y, stats = pl.pallas_call(
        _matmul_stats_kernel,
        out_shape=(jax.ShapeDtypeStruct((r_pad, c_pad), jnp.bfloat16),
                   jax.ShapeDtypeStruct((nt, 2, c_pad), jnp.float32)),
        grid=(nt,),
        in_specs=[pl.BlockSpec((tr, k_pad), lambda i: (i, 0)),
                  pl.BlockSpec((k_pad, c_pad), lambda i: (0, 0))],
        out_specs=(pl.BlockSpec((tr, c_pad), lambda i: (i, 0)),
                   pl.BlockSpec((None, 2, c_pad), lambda i: (i, 0, 0))),
        compiler_params=_compiler_params(),
    )(patches, wm)

    g = jnp.pad(gamma, (0, c_pad - c_out)).reshape(1, c_pad).astype(jnp.float32)
    b = jnp.pad(beta, (0, c_pad - c_out)).reshape(1, c_pad).astype(jnp.float32)

    # Pass 2: stats -> scale/shift folded in-kernel (no XLA glue), then
    # normalize + affine + LeakyReLU, lane-dense bf16 output.
    out = pl.pallas_call(
        functools.partial(_bn_lrelu_kernel, inv_n=1.0 / r, eps=eps),
        out_shape=jax.ShapeDtypeStruct((r_pad, c_pad), jnp.bfloat16),
        grid=(nt,),
        in_specs=[pl.BlockSpec((tr, c_pad), lambda i: (i, 0)),
                  pl.BlockSpec((nt, 2, c_pad), lambda i: (0, 0, 0)),
                  pl.BlockSpec((1, c_pad), lambda i: (0, 0)),
                  pl.BlockSpec((1, c_pad), lambda i: (0, 0))],
        out_specs=pl.BlockSpec((tr, c_pad), lambda i: (i, 0)),
        compiler_params=_compiler_params(),
    )(y, stats, g, b)

    return out[:r, :c_out].reshape(n, oh, ow, c_out)


def conv_sigmoid(x_nhwc, w, bias, *, stride, pad):
    """Final Conv2d + Sigmoid. C_out (=1) zero-padded to 128 lanes (lane-dense
    MXU columns / stores), sliced back afterwards."""
    c_out, _, k, _ = w.shape
    n = x_nhwc.shape[0]
    patches, oh, ow = _im2col_nhwc(x_nhwc.astype(jnp.bfloat16), k, stride, pad)
    r, kk = patches.shape
    k_pad = _round_up(kk, _LANE)
    c_pad = _round_up(c_out, _LANE)
    tr, r_pad, nt = _row_tiling(r)

    patches = jnp.pad(patches, ((0, r_pad - r), (0, k_pad - kk)))
    wm = _pack_weight(w, k_pad, c_pad)
    bm = jnp.pad(bias, (0, c_pad - c_out)).reshape(1, c_pad).astype(jnp.float32)

    out = pl.pallas_call(
        _matmul_bias_sigmoid_kernel,
        out_shape=jax.ShapeDtypeStruct((r_pad, c_pad), jnp.float32),
        grid=(nt,),
        in_specs=[pl.BlockSpec((tr, k_pad), lambda i: (i, 0)),
                  pl.BlockSpec((k_pad, c_pad), lambda i: (0, 0)),
                  pl.BlockSpec((1, c_pad), lambda i: (0, 0))],
        out_specs=pl.BlockSpec((tr, c_pad), lambda i: (i, 0)),
        compiler_params=_compiler_params(),
    )(patches, wm, bm)

    return out[:r, :c_out].reshape(n, oh, ow, c_out)


# ----------------------------- parameters ----------------------------------

def init_params(key):
    """Deterministic synthetic parameters matching the module's shapes."""
    def conv_init(k_, c_out, c_in, ksz):
        kw_, kb_ = jax.random.split(k_)
        fan_in = c_in * ksz * ksz
        bound = 1.0 / (fan_in ** 0.5)
        w = jax.random.uniform(kw_, (c_out, c_in, ksz, ksz), jnp.float32, -bound, bound)
        b = jax.random.uniform(kb_, (c_out,), jnp.float32, -bound, bound)
        return w, b

    keys = jax.random.split(key, 4)
    params = {}
    params["conv1_w"], params["conv1_b"] = conv_init(keys[0], 32, 3, 4)
    params["bn1_g"] = jnp.ones((32,), jnp.float32)
    params["bn1_b"] = jnp.zeros((32,), jnp.float32)
    params["conv2_w"], params["conv2_b"] = conv_init(keys[1], 64, 32, 4)
    params["bn2_g"] = jnp.ones((64,), jnp.float32)
    params["bn2_b"] = jnp.zeros((64,), jnp.float32)
    params["conv3_w"], params["conv3_b"] = conv_init(keys[2], 128, 64, 4)
    params["bn3_g"] = jnp.ones((128,), jnp.float32)
    params["bn3_b"] = jnp.zeros((128,), jnp.float32)
    params["conv4_w"], params["conv4_b"] = conv_init(keys[3], 1, 128, 4)
    return params


def dark_face_discriminator(params, x_nchw):
    # NCHW interface (PyTorch); NHWC internally with single transposes at the ends.
    x = jnp.transpose(x_nchw, (0, 2, 3, 1))
    # NOTE: conv1..3 biases exist in the parameter set (module fidelity) but are
    # mathematically cancelled by training-mode BatchNorm's mean subtraction.
    h = conv_bn_lrelu(x, params["conv1_w"], params["bn1_g"], params["bn1_b"],
                      stride=2, pad=1)
    h = conv_bn_lrelu(h, params["conv2_w"], params["bn2_g"], params["bn2_b"],
                      stride=2, pad=1)
    h = conv_bn_lrelu(h, params["conv3_w"], params["bn3_g"], params["bn3_b"],
                      stride=2, pad=1)
    h = conv_sigmoid(h, params["conv4_w"], params["conv4_b"], stride=1, pad=1)
    return jnp.transpose(h, (0, 3, 1, 2))


# ----------------------------- demo ----------------------------------------

if __name__ == "__main__":
    key = jax.random.PRNGKey(0)
    k_param, k_x = jax.random.split(key)
    params = init_params(k_param)
    # small input consistent with the module: N=2, C=3, H=W=16
    x = jax.random.normal(k_x, (2, 3, 16, 16), dtype=jnp.float32)

    out = jax.jit(dark_face_discriminator)(params, x)
    out = jax.block_until_ready(out)
    # expected output shape for 16x16 input: (2, 1, 1, 1)
    assert out.shape == (2, 1, 1, 1), out.shape
    assert bool(jnp.all((out >= 0.0) & (out <= 1.0)))
    print("KERNEL_OK")
</pallas_src>

<mosaic_0001>
module attributes {stable_mosaic.version = 11 : i64} {
  func.func @_bn_lrelu_kernel(%arg0: i32, %arg1: memref<128x128xbf16, #tpu.memory_space<vmem>>, %arg2: memref<1x2x128xf32, #tpu.memory_space<vmem>>, %arg3: memref<1x128xf32, #tpu.memory_space<vmem>>, %arg4: memref<1x128xf32, #tpu.memory_space<vmem>>, %arg5: memref<128x128xbf16, #tpu.memory_space<vmem>>) attributes {dimension_semantics = [#tpu.dimension_semantics<parallel>], iteration_bounds = array<i64: 1>, scalar_prefetch = 0 : i64, scratch_operands = 0 : i64, tpu.core_type = #tpu.core_type<tc>, window_params = [{transform_indices = @transform_0, window_bounds = array<i64: 128, 128>}, {pipeline_mode = #tpu.pipeline_mode<synchronous>, transform_indices = @transform_1, window_bounds = array<i64: 1, 2, 128>}, {pipeline_mode = #tpu.pipeline_mode<synchronous>, transform_indices = @transform_2, window_bounds = array<i64: 1, 128>}, {pipeline_mode = #tpu.pipeline_mode<synchronous>, transform_indices = @transform_3, window_bounds = array<i64: 1, 128>}, {transform_indices = @transform_4, window_bounds = array<i64: 128, 128>}]} {
    %c0 = arith.constant 0 : index
    %c0_0 = arith.constant 0 : index
    %c0_1 = arith.constant 0 : index
    %0 = vector.load %arg2[%c0, %c0_0, %c0_1] : memref<1x2x128xf32, #tpu.memory_space<vmem>>, vector<1x2x128xf32>
    %cst = arith.constant dense<0.000000e+00> : vector<2x128xf32>
    %1 = vector.multi_reduction <add>, %0, %cst [0] : vector<1x2x128xf32> to vector<2x128xf32>
    %2 = vector.extract_strided_slice %1 {offsets = [0, 0], sizes = [1, 128], strides = [1, 1]} : vector<2x128xf32> to vector<1x128xf32>
    %cst_2 = arith.constant 7.812500e-03 : f32
    %3 = vector.broadcast %cst_2 : f32 to vector<1x128xf32>
    %4 = arith.mulf %2, %3 : vector<1x128xf32>
    %5 = vector.extract_strided_slice %1 {offsets = [1, 0], sizes = [1, 128], strides = [1, 1]} : vector<2x128xf32> to vector<1x128xf32>
    %cst_3 = arith.constant 7.812500e-03 : f32
    %6 = vector.broadcast %cst_3 : f32 to vector<1x128xf32>
    %7 = arith.mulf %5, %6 : vector<1x128xf32>
    %8 = arith.mulf %4, %4 : vector<1x128xf32>
    %9 = arith.subf %7, %8 : vector<1x128xf32>
    %cst_4 = arith.constant 0.000000e+00 : f32
    %10 = vector.broadcast %cst_4 : f32 to vector<1x128xf32>
    %11 = arith.maximumf %9, %10 : vector<1x128xf32>
    %c0_5 = arith.constant 0 : index
    %c0_6 = arith.constant 0 : index
    %12 = vector.load %arg3[%c0_5, %c0_6] : memref<1x128xf32, #tpu.memory_space<vmem>>, vector<1x128xf32>
    %cst_7 = arith.constant 9.99999974E-6 : f32
    %13 = vector.broadcast %cst_7 : f32 to vector<1x128xf32>
    %14 = arith.addf %11, %13 : vector<1x128xf32>
    %15 = math.rsqrt %14 : vector<1x128xf32>
    %16 = arith.mulf %12, %15 : vector<1x128xf32>
    %c0_8 = arith.constant 0 : index
    %c0_9 = arith.constant 0 : index
    %17 = vector.load %arg4[%c0_8, %c0_9] : memref<1x128xf32, #tpu.memory_space<vmem>>, vector<1x128xf32>
    %18 = arith.mulf %4, %16 : vector<1x128xf32>
    %19 = arith.subf %17, %18 : vector<1x128xf32>
    %c0_10 = arith.constant 0 : index
    %c0_11 = arith.constant 0 : index
    %20 = vector.load %arg1[%c0_10, %c0_11] : memref<128x128xbf16, #tpu.memory_space<vmem>>, vector<128x128xbf16>
    %21 = arith.extf %20 : vector<128x128xbf16> to vector<128x128xf32>
    %22 = vector.broadcast %16 : vector<1x128xf32> to vector<128x128xf32>
    %23 = arith.mulf %21, %22 : vector<128x128xf32>
    %24 = vector.broadcast %19 : vector<1x128xf32> to vector<128x128xf32>
    %25 = arith.addf %23, %24 : vector<128x128xf32>
    %cst_12 = arith.constant 0.000000e+00 : f32
    %26 = vector.broadcast %cst_12 : f32 to vector<128x128xf32>
    %27 = arith.cmpf ogt, %25, %26 : vector<128x128xf32>
    %cst_13 = arith.constant 2.000000e-01 : f32
    %28 = vector.broadcast %cst_13 : f32 to vector<128x128xf32>
    %29 = arith.mulf %28, %25 : vector<128x128xf32>
    %30 = arith.select %27, %25, %29 : vector<128x128xi1>, vector<128x128xf32>
    %31 = arith.truncf %30 : vector<128x128xf32> to vector<128x128xbf16>
    %c0_14 = arith.constant 0 : index
    %c0_15 = arith.constant 0 : index
    %32 = vector.load %arg5[%c0_14, %c0_15] : memref<128x128xbf16, #tpu.memory_space<vmem>>, vector<128x128xbf16>
    tpu.vector_store %arg5[%c0_14, %c0_15], %31 {strides = array<i32>} : memref<128x128xbf16, #tpu.memory_space<vmem>>, vector<128x128xbf16>,
    return
  }
  func.func @transform_0(%arg0: i32) -> (i32, i32) {
    %c0_i32 = arith.constant 0 : i32
    %c0_i32_0 = arith.constant 0 : i32
    return %arg0, %c0_i32 : i32, i32
  }
  func.func @transform_1(%arg0: i32) -> (i32, i32, i32) {
    %c0_i32 = arith.constant 0 : i32
    %c0_i32_0 = arith.constant 0 : i32
    %c0_i32_1 = arith.constant 0 : i32
    %c0_i32_2 = arith.constant 0 : i32
    return %c0_i32, %c0_i32_0, %c0_i32_1 : i32, i32, i32
  }
  func.func @transform_2(%arg0: i32) -> (i32, i32) {
    %c0_i32 = arith.constant 0 : i32
    %c0_i32_0 = arith.constant 0 : i32
    %c0_i32_1 = arith.constant 0 : i32
    return %c0_i32, %c0_i32_0 : i32, i32
  }
  func.func @transform_3(%arg0: i32) -> (i32, i32) {
    %c0_i32 = arith.constant 0 : i32
    %c0_i32_0 = arith.constant 0 : i32
    %c0_i32_1 = arith.constant 0 : i32
    return %c0_i32, %c0_i32_0 : i32, i32
  }
  func.func @transform_4(%arg0: i32) -> (i32, i32) {
    %c0_i32 = arith.constant 0 : i32
    %c0_i32_0 = arith.constant 0 : i32
    return %arg0, %c0_i32 : i32, i32
  }
}

module attributes {stable_mosaic.version = 11 : i64} {
  func.func @_matmul_stats_kernel(%arg0: i32, %arg1: memref<128x128xbf16, #tpu.memory_space<vmem>>, %arg2: memref<128x128xbf16, #tpu.memory_space<vmem>>, %arg3: memref<128x128xbf16, #tpu.memory_space<vmem>>, %arg4: memref<1x2x128xf32, #tpu.memory_space<vmem>>) attributes {dimension_semantics = [#tpu.dimension_semantics<parallel>], iteration_bounds = array<i64: 1>, scalar_prefetch = 0 : i64, scratch_operands = 0 : i64, tpu.core_type = #tpu.core_type<tc>, window_params = [{transform_indices = @transform_0, window_bounds = array<i64: 128, 128>}, {pipeline_mode = #tpu.pipeline_mode<synchronous>, transform_indices = @transform_1, window_bounds = array<i64: 128, 128>}, {transform_indices = @transform_2, window_bounds = array<i64: 128, 128>}, {transform_indices = @transform_3, window_bounds = array<i64: 1, 2, 128>}]} {
    %c0 = arith.constant 0 : index
    %c0_0 = arith.constant 0 : index
    %0 = vector.load %arg1[%c0, %c0_0] : memref<128x128xbf16, #tpu.memory_space<vmem>>, vector<128x128xbf16>
    %c0_1 = arith.constant 0 : index
    %c0_2 = arith.constant 0 : index
    %1 = vector.load %arg2[%c0_1, %c0_2] : memref<128x128xbf16, #tpu.memory_space<vmem>>, vector<128x128xbf16>
    %cst = arith.constant dense<0.000000e+00> : vector<128x128xf32>
    %2 = tpu.matmul %0, %1, %cst {dimension_numbers = #tpu.dot_dimension_numbers<[1], [0], [0], [1], [0, 0, 1, 1], [], []>} : vector<128x128xbf16>, vector<128x128xbf16>, vector<128x128xf32> -> vector<128x128xf32>
    %3 = arith.truncf %2 : vector<128x128xf32> to vector<128x128xbf16>
    %c0_3 = arith.constant 0 : index
    %c0_4 = arith.constant 0 : index
    %4 = vector.load %arg3[%c0_3, %c0_4] : memref<128x128xbf16, #tpu.memory_space<vmem>>, vector<128x128xbf16>
    tpu.vector_store %arg3[%c0_3, %c0_4], %3 {strides = array<i32>} : memref<128x128xbf16, #tpu.memory_space<vmem>>, vector<128x128xbf16>,
    %cst_5 = arith.constant dense<0.000000e+00> : vector<128xf32>
    %5 = vector.multi_reduction <add>, %2, %cst_5 [0] : vector<128x128xf32> to vector<128xf32>
    %6 = vector.shape_cast %5 : vector<128xf32> to vector<1x128xf32>
    %7 = arith.mulf %2, %2 : vector<128x128xf32>
    %cst_6 = arith.constant dense<0.000000e+00> : vector<128xf32>
    %8 = vector.multi_reduction <add>, %7, %cst_6 [0] : vector<128x128xf32> to vector<128xf32>
    %9 = vector.shape_cast %8 : vector<128xf32> to vector<1x128xf32>
    %10 = tpu.iota {dimensions = array<i32: 0>} : vector<2x128xi32>
    %c0_i32 = arith.constant 0 : i32
    %11 = vector.broadcast %c0_i32 : i32 to vector<2x128xi32>
    %12 = arith.cmpi eq, %10, %11 : vector<2x128xi32>
    %13 = vector.shape_cast %6 : vector<1x128xf32> to vector<1x128xf32>
    %14 = vector.broadcast %13 : vector<1x128xf32> to vector<2x128xf32>
    %15 = vector.shape_cast %9 : vector<1x128xf32> to vector<1x128xf32>
    %16 = vector.broadcast %15 : vector<1x128xf32> to vector<2x128xf32>
    %17 = arith.select %12, %14, %16 : vector<2x128xi1>, vector<2x128xf32>
    %c0_7 = arith.constant 0 : index
    %c0_8 = arith.constant 0 : index
    %c0_9 = arith.constant 0 : index
    %18 = vector.load %arg4[%c0_7, %c0_8, %c0_9] : memref<1x2x128xf32, #tpu.memory_space<vmem>>, vector<1x2x128xf32>
    %19 = vector.shape_cast %18 : vector<1x2x128xf32> to vector<2x128xf32>
    %20 = vector.shape_cast %17 : vector<2x128xf32> to vector<1x2x128xf32>
    tpu.vector_store %arg4[%c0_7, %c0_8, %c0_9], %20 {strides = array<i32>} : memref<1x2x128xf32, #tpu.memory_space<vmem>>, vector<1x2x128xf32>,
    return
  }
  func.func @transform_0(%arg0: i32) -> (i32, i32) {
    %c0_i32 = arith.constant 0 : i32
    %c0_i32_0 = arith.constant 0 : i32
    return %arg0, %c0_i32 : i32, i32
  }
  func.func @transform_1(%arg0: i32) -> (i32, i32) {
    %c0_i32 = arith.constant 0 : i32
    %c0_i32_0 = arith.constant 0 : i32
    %c0_i32_1 = arith.constant 0 : i32
    return %c0_i32, %c0_i32_0 : i32, i32
  }
  func.func @transform_2(%arg0: i32) -> (i32, i32) {
    %c0_i32 = arith.constant 0 : i32
    %c0_i32_0 = arith.constant 0 : i32
    return %arg0, %c0_i32 : i32, i32
  }
  func.func @transform_3(%arg0: i32) -> (i32, i32, i32) {
    %c0_i32 = arith.constant 0 : i32
    %c0_i32_0 = arith.constant 0 : i32
    %c0_i32_1 = arith.constant 0 : i32
    return %arg0, %c0_i32, %c0_i32_0 : i32, i32, i32
  }
}

module attributes {stable_mosaic.version = 11 : i64} {
  func.func @_matmul_stats_kernel(%arg0: i32, %arg1: memref<32x512xbf16, #tpu.memory_space<vmem>>, %arg2: memref<512x128xbf16, #tpu.memory_space<vmem>>, %arg3: memref<32x128xbf16, #tpu.memory_space<vmem>>, %arg4: memref<1x2x128xf32, #tpu.memory_space<vmem>>) attributes {dimension_semantics = [#tpu.dimension_semantics<parallel>], iteration_bounds = array<i64: 1>, scalar_prefetch = 0 : i64, scratch_operands = 0 : i64, tpu.core_type = #tpu.core_type<tc>, window_params = [{transform_indices = @transform_0, window_bounds = array<i64: 32, 512>}, {pipeline_mode = #tpu.pipeline_mode<synchronous>, transform_indices = @transform_1, window_bounds = array<i64: 512, 128>}, {transform_indices = @transform_2, window_bounds = array<i64: 32, 128>}, {transform_indices = @transform_3, window_bounds = array<i64: 1, 2, 128>}]} {
    %c0 = arith.constant 0 : index
    %c0_0 = arith.constant 0 : index
    %0 = vector.load %arg1[%c0, %c0_0] : memref<32x512xbf16, #tpu.memory_space<vmem>>, vector<32x512xbf16>
    %c0_1 = arith.constant 0 : index
    %c0_2 = arith.constant 0 : index
    %1 = vector.load %arg2[%c0_1, %c0_2] : memref<512x128xbf16, #tpu.memory_space<vmem>>, vector<512x128xbf16>
    %cst = arith.constant dense<0.000000e+00> : vector<32x128xf32>
    %2 = tpu.matmul %0, %1, %cst {dimension_numbers = #tpu.dot_dimension_numbers<[1], [0], [0], [1], [0, 0, 1, 1], [], []>} : vector<32x512xbf16>, vector<512x128xbf16>, vector<32x128xf32> -> vector<32x128xf32>
    %3 = arith.truncf %2 : vector<32x128xf32> to vector<32x128xbf16>
    %c0_3 = arith.constant 0 : index
    %c0_4 = arith.constant 0 : index
    %4 = vector.load %arg3[%c0_3, %c0_4] : memref<32x128xbf16, #tpu.memory_space<vmem>>, vector<32x128xbf16>
    tpu.vector_store %arg3[%c0_3, %c0_4], %3 {strides = array<i32>} : memref<32x128xbf16, #tpu.memory_space<vmem>>, vector<32x128xbf16>,
    %cst_5 = arith.constant dense<0.000000e+00> : vector<128xf32>
    %5 = vector.multi_reduction <add>, %2, %cst_5 [0] : vector<32x128xf32> to vector<128xf32>
    %6 = vector.shape_cast %5 : vector<128xf32> to vector<1x128xf32>
    %7 = arith.mulf %2, %2 : vector<32x128xf32>
    %cst_6 = arith.constant dense<0.000000e+00> : vector<128xf32>
    %8 = vector.multi_reduction <add>, %7, %cst_6 [0] : vector<32x128xf32> to vector<128xf32>
    %9 = vector.shape_cast %8 : vector<128xf32> to vector<1x128xf32>
    %10 = tpu.iota {dimensions = array<i32: 0>} : vector<2x128xi32>
    %c0_i32 = arith.constant 0 : i32
    %11 = vector.broadcast %c0_i32 : i32 to vector<2x128xi32>
    %12 = arith.cmpi eq, %10, %11 : vector<2x128xi32>
    %13 = vector.shape_cast %6 : vector<1x128xf32> to vector<1x128xf32>
    %14 = vector.broadcast %13 : vector<1x128xf32> to vector<2x128xf32>
    %15 = vector.shape_cast %9 : vector<1x128xf32> to vector<1x128xf32>
    %16 = vector.broadcast %15 : vector<1x128xf32> to vector<2x128xf32>
    %17 = arith.select %12, %14, %16 : vector<2x128xi1>, vector<2x128xf32>
    %c0_7 = arith.constant 0 : index
    %c0_8 = arith.constant 0 : index
    %c0_9 = arith.constant 0 : index
    %18 = vector.load %arg4[%c0_7, %c0_8, %c0_9] : memref<1x2x128xf32, #tpu.memory_space<vmem>>, vector<1x2x128xf32>
    %19 = vector.shape_cast %18 : vector<1x2x128xf32> to vector<2x128xf32>
    %20 = vector.shape_cast %17 : vector<2x128xf32> to vector<1x2x128xf32>
    tpu.vector_store %arg4[%c0_7, %c0_8, %c0_9], %20 {strides = array<i32>} : memref<1x2x128xf32, #tpu.memory_space<vmem>>, vector<1x2x128xf32>,
    return
  }
  func.func @transform_0(%arg0: i32) -> (i32, i32) {
    %c0_i32 = arith.constant 0 : i32
    %c0_i32_0 = arith.constant 0 : i32
    return %arg0, %c0_i32 : i32, i32
  }
  func.func @transform_1(%arg0: i32) -> (i32, i32) {
    %c0_i32 = arith.constant 0 : i32
    %c0_i32_0 = arith.constant 0 : i32
    %c0_i32_1 = arith.constant 0 : i32
    return %c0_i32, %c0_i32_0 : i32, i32
  }
  func.func @transform_2(%arg0: i32) -> (i32, i32) {
    %c0_i32 = arith.constant 0 : i32
    %c0_i32_0 = arith.constant 0 : i32
    return %arg0, %c0_i32 : i32, i32
  }
  func.func @transform_3(%arg0: i32) -> (i32, i32, i32) {
    %c0_i32 = arith.constant 0 : i32
    %c0_i32_0 = arith.constant 0 : i32
    %c0_i32_1 = arith.constant 0 : i32
    return %arg0, %c0_i32, %c0_i32_0 : i32, i32, i32
  }
}

module attributes {stable_mosaic.version = 11 : i64} {
  func.func @_bn_lrelu_kernel(%arg0: i32, %arg1: memref<32x128xbf16, #tpu.memory_space<vmem>>, %arg2: memref<1x2x128xf32, #tpu.memory_space<vmem>>, %arg3: memref<1x128xf32, #tpu.memory_space<vmem>>, %arg4: memref<1x128xf32, #tpu.memory_space<vmem>>, %arg5: memref<32x128xbf16, #tpu.memory_space<vmem>>) attributes {dimension_semantics = [#tpu.dimension_semantics<parallel>], iteration_bounds = array<i64: 1>, scalar_prefetch = 0 : i64, scratch_operands = 0 : i64, tpu.core_type = #tpu.core_type<tc>, window_params = [{transform_indices = @transform_0, window_bounds = array<i64: 32, 128>}, {pipeline_mode = #tpu.pipeline_mode<synchronous>, transform_indices = @transform_1, window_bounds = array<i64: 1, 2, 128>}, {pipeline_mode = #tpu.pipeline_mode<synchronous>, transform_indices = @transform_2, window_bounds = array<i64: 1, 128>}, {pipeline_mode = #tpu.pipeline_mode<synchronous>, transform_indices = @transform_3, window_bounds = array<i64: 1, 128>}, {transform_indices = @transform_4, window_bounds = array<i64: 32, 128>}]} {
    %c0 = arith.constant 0 : index
    %c0_0 = arith.constant 0 : index
    %c0_1 = arith.constant 0 : index
    %0 = vector.load %arg2[%c0, %c0_0, %c0_1] : memref<1x2x128xf32, #tpu.memory_space<vmem>>, vector<1x2x128xf32>
    %cst = arith.constant dense<0.000000e+00> : vector<2x128xf32>
    %1 = vector.multi_reduction <add>, %0, %cst [0] : vector<1x2x128xf32> to vector<2x128xf32>
    %2 = vector.extract_strided_slice %1 {offsets = [0, 0], sizes = [1, 128], strides = [1, 1]} : vector<2x128xf32> to vector<1x128xf32>
    %cst_2 = arith.constant 3.125000e-02 : f32
    %3 = vector.broadcast %cst_2 : f32 to vector<1x128xf32>
    %4 = arith.mulf %2, %3 : vector<1x128xf32>
    %5 = vector.extract_strided_slice %1 {offsets = [1, 0], sizes = [1, 128], strides = [1, 1]} : vector<2x128xf32> to vector<1x128xf32>
    %cst_3 = arith.constant 3.125000e-02 : f32
    %6 = vector.broadcast %cst_3 : f32 to vector<1x128xf32>
    %7 = arith.mulf %5, %6 : vector<1x128xf32>
    %8 = arith.mulf %4, %4 : vector<1x128xf32>
    %9 = arith.subf %7, %8 : vector<1x128xf32>
    %cst_4 = arith.constant 0.000000e+00 : f32
    %10 = vector.broadcast %cst_4 : f32 to vector<1x128xf32>
    %11 = arith.maximumf %9, %10 : vector<1x128xf32>
    %c0_5 = arith.constant 0 : index
    %c0_6 = arith.constant 0 : index
    %12 = vector.load %arg3[%c0_5, %c0_6] : memref<1x128xf32, #tpu.memory_space<vmem>>, vector<1x128xf32>
    %cst_7 = arith.constant 9.99999974E-6 : f32
    %13 = vector.broadcast %cst_7 : f32 to vector<1x128xf32>
    %14 = arith.addf %11, %13 : vector<1x128xf32>
    %15 = math.rsqrt %14 : vector<1x128xf32>
    %16 = arith.mulf %12, %15 : vector<1x128xf32>
    %c0_8 = arith.constant 0 : index
    %c0_9 = arith.constant 0 : index
    %17 = vector.load %arg4[%c0_8, %c0_9] : memref<1x128xf32, #tpu.memory_space<vmem>>, vector<1x128xf32>
    %18 = arith.mulf %4, %16 : vector<1x128xf32>
    %19 = arith.subf %17, %18 : vector<1x128xf32>
    %c0_10 = arith.constant 0 : index
    %c0_11 = arith.constant 0 : index
    %20 = vector.load %arg1[%c0_10, %c0_11] : memref<32x128xbf16, #tpu.memory_space<vmem>>, vector<32x128xbf16>
    %21 = arith.extf %20 : vector<32x128xbf16> to vector<32x128xf32>
    %22 = vector.broadcast %16 : vector<1x128xf32> to vector<32x128xf32>
    %23 = arith.mulf %21, %22 : vector<32x128xf32>
    %24 = vector.broadcast %19 : vector<1x128xf32> to vector<32x128xf32>
    %25 = arith.addf %23, %24 : vector<32x128xf32>
    %cst_12 = arith.constant 0.000000e+00 : f32
    %26 = vector.broadcast %cst_12 : f32 to vector<32x128xf32>
    %27 = arith.cmpf ogt, %25, %26 : vector<32x128xf32>
    %cst_13 = arith.constant 2.000000e-01 : f32
    %28 = vector.broadcast %cst_13 : f32 to vector<32x128xf32>
    %29 = arith.mulf %28, %25 : vector<32x128xf32>
    %30 = arith.select %27, %25, %29 : vector<32x128xi1>, vector<32x128xf32>
    %31 = arith.truncf %30 : vector<32x128xf32> to vector<32x128xbf16>
    %c0_14 = arith.constant 0 : index
    %c0_15 = arith.constant 0 : index
    %32 = vector.load %arg5[%c0_14, %c0_15] : memref<32x128xbf16, #tpu.memory_space<vmem>>, vector<32x128xbf16>
    tpu.vector_store %arg5[%c0_14, %c0_15], %31 {strides = array<i32>} : memref<32x128xbf16, #tpu.memory_space<vmem>>, vector<32x128xbf16>,
    return
  }
  func.func @transform_0(%arg0: i32) -> (i32, i32) {
    %c0_i32 = arith.constant 0 : i32
    %c0_i32_0 = arith.constant 0 : i32
    return %arg0, %c0_i32 : i32, i32
  }
  func.func @transform_1(%arg0: i32) -> (i32, i32, i32) {
    %c0_i32 = arith.constant 0 : i32
    %c0_i32_0 = arith.constant 0 : i32
    %c0_i32_1 = arith.constant 0 : i32
    %c0_i32_2 = arith.constant 0 : i32
    return %c0_i32, %c0_i32_0, %c0_i32_1 : i32, i32, i32
  }
  func.func @transform_2(%arg0: i32) -> (i32, i32) {
    %c0_i32 = arith.constant 0 : i32
    %c0_i32_0 = arith.constant 0 : i32
    %c0_i32_1 = arith.constant 0 : i32
    return %c0_i32, %c0_i32_0 : i32, i32
  }
  func.func @transform_3(%arg0: i32) -> (i32, i32) {
    %c0_i32 = arith.constant 0 : i32
    %c0_i32_0 = arith.constant 0 : i32
    %c0_i32_1 = arith.constant 0 : i32
    return %c0_i32, %c0_i32_0 : i32, i32
  }
  func.func @transform_4(%arg0: i32) -> (i32, i32) {
    %c0_i32 = arith.constant 0 : i32
    %c0_i32_0 = arith.constant 0 : i32
    return %arg0, %c0_i32 : i32, i32
  }
}

module attributes {stable_mosaic.version = 11 : i64} {
  func.func @_matmul_stats_kernel(%arg0: i32, %arg1: memref<8x1024xbf16, #tpu.memory_space<vmem>>, %arg2: memref<1024x128xbf16, #tpu.memory_space<vmem>>, %arg3: memref<8x128xbf16, #tpu.memory_space<vmem>>, %arg4: memref<1x2x128xf32, #tpu.memory_space<vmem>>) attributes {dimension_semantics = [#tpu.dimension_semantics<parallel>], iteration_bounds = array<i64: 1>, scalar_prefetch = 0 : i64, scratch_operands = 0 : i64, tpu.core_type = #tpu.core_type<tc>, window_params = [{transform_indices = @transform_0, window_bounds = array<i64: 8, 1024>}, {pipeline_mode = #tpu.pipeline_mode<synchronous>, transform_indices = @transform_1, window_bounds = array<i64: 1024, 128>}, {transform_indices = @transform_2, window_bounds = array<i64: 8, 128>}, {transform_indices = @transform_3, window_bounds = array<i64: 1, 2, 128>}]} {
    %c0 = arith.constant 0 : index
    %c0_0 = arith.constant 0 : index
    %0 = vector.load %arg1[%c0, %c0_0] : memref<8x1024xbf16, #tpu.memory_space<vmem>>, vector<8x1024xbf16>
    %c0_1 = arith.constant 0 : index
    %c0_2 = arith.constant 0 : index
    %1 = vector.load %arg2[%c0_1, %c0_2] : memref<1024x128xbf16, #tpu.memory_space<vmem>>, vector<1024x128xbf16>
    %cst = arith.constant dense<0.000000e+00> : vector<8x128xf32>
    %2 = tpu.matmul %0, %1, %cst {dimension_numbers = #tpu.dot_dimension_numbers<[1], [0], [0], [1], [0, 0, 1, 1], [], []>} : vector<8x1024xbf16>, vector<1024x128xbf16>, vector<8x128xf32> -> vector<8x128xf32>
    %3 = arith.truncf %2 : vector<8x128xf32> to vector<8x128xbf16>
    %c0_3 = arith.constant 0 : index
    %c0_4 = arith.constant 0 : index
    %4 = vector.load %arg3[%c0_3, %c0_4] : memref<8x128xbf16, #tpu.memory_space<vmem>>, vector<8x128xbf16>
    tpu.vector_store %arg3[%c0_3, %c0_4], %3 {strides = array<i32>} : memref<8x128xbf16, #tpu.memory_space<vmem>>, vector<8x128xbf16>,
    %cst_5 = arith.constant dense<0.000000e+00> : vector<128xf32>
    %5 = vector.multi_reduction <add>, %2, %cst_5 [0] : vector<8x128xf32> to vector<128xf32>
    %6 = vector.shape_cast %5 : vector<128xf32> to vector<1x128xf32>
    %7 = arith.mulf %2, %2 : vector<8x128xf32>
    %cst_6 = arith.constant dense<0.000000e+00> : vector<128xf32>
    %8 = vector.multi_reduction <add>, %7, %cst_6 [0] : vector<8x128xf32> to vector<128xf32>
    %9 = vector.shape_cast %8 : vector<128xf32> to vector<1x128xf32>
    %10 = tpu.iota {dimensions = array<i32: 0>} : vector<2x128xi32>
    %c0_i32 = arith.constant 0 : i32
    %11 = vector.broadcast %c0_i32 : i32 to vector<2x128xi32>
    %12 = arith.cmpi eq, %10, %11 : vector<2x128xi32>
    %13 = vector.shape_cast %6 : vector<1x128xf32> to vector<1x128xf32>
    %14 = vector.broadcast %13 : vector<1x128xf32> to vector<2x128xf32>
    %15 = vector.shape_cast %9 : vector<1x128xf32> to vector<1x128xf32>
    %16 = vector.broadcast %15 : vector<1x128xf32> to vector<2x128xf32>
    %17 = arith.select %12, %14, %16 : vector<2x128xi1>, vector<2x128xf32>
    %c0_7 = arith.constant 0 : index
    %c0_8 = arith.constant 0 : index
    %c0_9 = arith.constant 0 : index
    %18 = vector.load %arg4[%c0_7, %c0_8, %c0_9] : memref<1x2x128xf32, #tpu.memory_space<vmem>>, vector<1x2x128xf32>
    %19 = vector.shape_cast %18 : vector<1x2x128xf32> to vector<2x128xf32>
    %20 = vector.shape_cast %17 : vector<2x128xf32> to vector<1x2x128xf32>
    tpu.vector_store %arg4[%c0_7, %c0_8, %c0_9], %20 {strides = array<i32>} : memref<1x2x128xf32, #tpu.memory_space<vmem>>, vector<1x2x128xf32>,
    return
  }
  func.func @transform_0(%arg0: i32) -> (i32, i32) {
    %c0_i32 = arith.constant 0 : i32
    %c0_i32_0 = arith.constant 0 : i32
    return %arg0, %c0_i32 : i32, i32
  }
  func.func @transform_1(%arg0: i32) -> (i32, i32) {
    %c0_i32 = arith.constant 0 : i32
    %c0_i32_0 = arith.constant 0 : i32
    %c0_i32_1 = arith.constant 0 : i32
    return %c0_i32, %c0_i32_0 : i32, i32
  }
  func.func @transform_2(%arg0: i32) -> (i32, i32) {
    %c0_i32 = arith.constant 0 : i32
    %c0_i32_0 = arith.constant 0 : i32
    return %arg0, %c0_i32 : i32, i32
  }
  func.func @transform_3(%arg0: i32) -> (i32, i32, i32) {
    %c0_i32 = arith.constant 0 : i32
    %c0_i32_0 = arith.constant 0 : i32
    %c0_i32_1 = arith.constant 0 : i32
    return %arg0, %c0_i32, %c0_i32_0 : i32, i32, i32
  }
}

module attributes {stable_mosaic.version = 11 : i64} {
  func.func @_bn_lrelu_kernel(%arg0: i32, %arg1: memref<8x128xbf16, #tpu.memory_space<vmem>>, %arg2: memref<1x2x128xf32, #tpu.memory_space<vmem>>, %arg3: memref<1x128xf32, #tpu.memory_space<vmem>>, %arg4: memref<1x128xf32, #tpu.memory_space<vmem>>, %arg5: memref<8x128xbf16, #tpu.memory_space<vmem>>) attributes {dimension_semantics = [#tpu.dimension_semantics<parallel>], iteration_bounds = array<i64: 1>, scalar_prefetch = 0 : i64, scratch_operands = 0 : i64, tpu.core_type = #tpu.core_type<tc>, window_params = [{transform_indices = @transform_0, window_bounds = array<i64: 8, 128>}, {pipeline_mode = #tpu.pipeline_mode<synchronous>, transform_indices = @transform_1, window_bounds = array<i64: 1, 2, 128>}, {pipeline_mode = #tpu.pipeline_mode<synchronous>, transform_indices = @transform_2, window_bounds = array<i64: 1, 128>}, {pipeline_mode = #tpu.pipeline_mode<synchronous>, transform_indices = @transform_3, window_bounds = array<i64: 1, 128>}, {transform_indices = @transform_4, window_bounds = array<i64: 8, 128>}]} {
    %c0 = arith.constant 0 : index
    %c0_0 = arith.constant 0 : index
    %c0_1 = arith.constant 0 : index
    %0 = vector.load %arg2[%c0, %c0_0, %c0_1] : memref<1x2x128xf32, #tpu.memory_space<vmem>>, vector<1x2x128xf32>
    %cst = arith.constant dense<0.000000e+00> : vector<2x128xf32>
    %1 = vector.multi_reduction <add>, %0, %cst [0] : vector<1x2x128xf32> to vector<2x128xf32>
    %2 = vector.extract_strided_slice %1 {offsets = [0, 0], sizes = [1, 128], strides = [1, 1]} : vector<2x128xf32> to vector<1x128xf32>
    %cst_2 = arith.constant 1.250000e-01 : f32
    %3 = vector.broadcast %cst_2 : f32 to vector<1x128xf32>
    %4 = arith.mulf %2, %3 : vector<1x128xf32>
    %5 = vector.extract_strided_slice %1 {offsets = [1, 0], sizes = [1, 128], strides = [1, 1]} : vector<2x128xf32> to vector<1x128xf32>
    %cst_3 = arith.constant 1.250000e-01 : f32
    %6 = vector.broadcast %cst_3 : f32 to vector<1x128xf32>
    %7 = arith.mulf %5, %6 : vector<1x128xf32>
    %8 = arith.mulf %4, %4 : vector<1x128xf32>
    %9 = arith.subf %7, %8 : vector<1x128xf32>
    %cst_4 = arith.constant 0.000000e+00 : f32
    %10 = vector.broadcast %cst_4 : f32 to vector<1x128xf32>
    %11 = arith.maximumf %9, %10 : vector<1x128xf32>
    %c0_5 = arith.constant 0 : index
    %c0_6 = arith.constant 0 : index
    %12 = vector.load %arg3[%c0_5, %c0_6] : memref<1x128xf32, #tpu.memory_space<vmem>>, vector<1x128xf32>
    %cst_7 = arith.constant 9.99999974E-6 : f32
    %13 = vector.broadcast %cst_7 : f32 to vector<1x128xf32>
    %14 = arith.addf %11, %13 : vector<1x128xf32>
    %15 = math.rsqrt %14 : vector<1x128xf32>
    %16 = arith.mulf %12, %15 : vector<1x128xf32>
    %c0_8 = arith.constant 0 : index
    %c0_9 = arith.constant 0 : index
    %17 = vector.load %arg4[%c0_8, %c0_9] : memref<1x128xf32, #tpu.memory_space<vmem>>, vector<1x128xf32>
    %18 = arith.mulf %4, %16 : vector<1x128xf32>
    %19 = arith.subf %17, %18 : vector<1x128xf32>
    %c0_10 = arith.constant 0 : index
    %c0_11 = arith.constant 0 : index
    %20 = vector.load %arg1[%c0_10, %c0_11] : memref<8x128xbf16, #tpu.memory_space<vmem>>, vector<8x128xbf16>
    %21 = arith.extf %20 : vector<8x128xbf16> to vector<8x128xf32>
    %22 = vector.broadcast %16 : vector<1x128xf32> to vector<8x128xf32>
    %23 = arith.mulf %21, %22 : vector<8x128xf32>
    %24 = vector.broadcast %19 : vector<1x128xf32> to vector<8x128xf32>
    %25 = arith.addf %23, %24 : vector<8x128xf32>
    %cst_12 = arith.constant 0.000000e+00 : f32
    %26 = vector.broadcast %cst_12 : f32 to vector<8x128xf32>
    %27 = arith.cmpf ogt, %25, %26 : vector<8x128xf32>
    %cst_13 = arith.constant 2.000000e-01 : f32
    %28 = vector.broadcast %cst_13 : f32 to vector<8x128xf32>
    %29 = arith.mulf %28, %25 : vector<8x128xf32>
    %30 = arith.select %27, %25, %29 : vector<8x128xi1>, vector<8x128xf32>
    %31 = arith.truncf %30 : vector<8x128xf32> to vector<8x128xbf16>
    %c0_14 = arith.constant 0 : index
    %c0_15 = arith.constant 0 : index
    %32 = vector.load %arg5[%c0_14, %c0_15] : memref<8x128xbf16, #tpu.memory_space<vmem>>, vector<8x128xbf16>
    tpu.vector_store %arg5[%c0_14, %c0_15], %31 {strides = array<i32>} : memref<8x128xbf16, #tpu.memory_space<vmem>>, vector<8x128xbf16>,
    return
  }
  func.func @transform_0(%arg0: i32) -> (i32, i32) {
    %c0_i32 = arith.constant 0 : i32
    %c0_i32_0 = arith.constant 0 : i32
    return %arg0, %c0_i32 : i32, i32
  }
  func.func @transform_1(%arg0: i32) -> (i32, i32, i32) {
    %c0_i32 = arith.constant 0 : i32
    %c0_i32_0 = arith.constant 0 : i32
    %c0_i32_1 = arith.constant 0 : i32
    %c0_i32_2 = arith.constant 0 : i32
    return %c0_i32, %c0_i32_0, %c0_i32_1 : i32, i32, i32
  }
  func.func @transform_2(%arg0: i32) -> (i32, i32) {
    %c0_i32 = arith.constant 0 : i32
    %c0_i32_0 = arith.constant 0 : i32
    %c0_i32_1 = arith.constant 0 : i32
    return %c0_i32, %c0_i32_0 : i32, i32
  }
  func.func @transform_3(%arg0: i32) -> (i32, i32) {
    %c0_i32 = arith.constant 0 : i32
    %c0_i32_0 = arith.constant 0 : i32
    %c0_i32_1 = arith.constant 0 : i32
    return %c0_i32, %c0_i32_0 : i32, i32
  }
  func.func @transform_4(%arg0: i32) -> (i32, i32) {
    %c0_i32 = arith.constant 0 : i32
    %c0_i32_0 = arith.constant 0 : i32
    return %arg0, %c0_i32 : i32, i32
  }
}

module attributes {stable_mosaic.version = 11 : i64} {
  func.func @_matmul_bias_sigmoid_kernel(%arg0: i32, %arg1: memref<8x2048xbf16, #tpu.memory_space<vmem>>, %arg2: memref<2048x128xbf16, #tpu.memory_space<vmem>>, %arg3: memref<1x128xf32, #tpu.memory_space<vmem>>, %arg4: memref<8x128xf32, #tpu.memory_space<vmem>>) attributes {dimension_semantics = [#tpu.dimension_semantics<parallel>], iteration_bounds = array<i64: 1>, scalar_prefetch = 0 : i64, scratch_operands = 0 : i64, tpu.core_type = #tpu.core_type<tc>, window_params = [{transform_indices = @transform_0, window_bounds = array<i64: 8, 2048>}, {pipeline_mode = #tpu.pipeline_mode<synchronous>, transform_indices = @transform_1, window_bounds = array<i64: 2048, 128>}, {pipeline_mode = #tpu.pipeline_mode<synchronous>, transform_indices = @transform_2, window_bounds = array<i64: 1, 128>}, {transform_indices = @transform_3, window_bounds = array<i64: 8, 128>}]} {
    %c0 = arith.constant 0 : index
    %c0_0 = arith.constant 0 : index
    %0 = vector.load %arg1[%c0, %c0_0] : memref<8x2048xbf16, #tpu.memory_space<vmem>>, vector<8x2048xbf16>
    %c0_1 = arith.constant 0 : index
    %c0_2 = arith.constant 0 : index
    %1 = vector.load %arg2[%c0_1, %c0_2] : memref<2048x128xbf16, #tpu.memory_space<vmem>>, vector<2048x128xbf16>
    %cst = arith.constant dense<0.000000e+00> : vector<8x128xf32>
    %2 = tpu.matmul %0, %1, %cst {dimension_numbers = #tpu.dot_dimension_numbers<[1], [0], [0], [1], [0, 0, 1, 1], [], []>} : vector<8x2048xbf16>, vector<2048x128xbf16>, vector<8x128xf32> -> vector<8x128xf32>
    %c0_3 = arith.constant 0 : index
    %c0_4 = arith.constant 0 : index
    %3 = vector.load %arg3[%c0_3, %c0_4] : memref<1x128xf32, #tpu.memory_space<vmem>>, vector<1x128xf32>
    %4 = vector.broadcast %3 : vector<1x128xf32> to vector<8x128xf32>
    %5 = arith.addf %2, %4 : vector<8x128xf32>
    %6 = arith.negf %5 : vector<8x128xf32>
    %7 = math.exp %6 : vector<8x128xf32>
    %cst_5 = arith.constant 1.000000e+00 : f32
    %8 = vector.broadcast %cst_5 : f32 to vector<8x128xf32>
    %9 = arith.addf %8, %7 : vector<8x128xf32>
    %10 = arith.divf %8, %9 : vector<8x128xf32>
    %c0_6 = arith.constant 0 : index
    %c0_7 = arith.constant 0 : index
    %11 = vector.load %arg4[%c0_6, %c0_7] : memref<8x128xf32, #tpu.memory_space<vmem>>, vector<8x128xf32>
    tpu.vector_store %arg4[%c0_6, %c0_7], %10 {strides = array<i32>} : memref<8x128xf32, #tpu.memory_space<vmem>>, vector<8x128xf32>,
    return
  }
  func.func @transform_0(%arg0: i32) -> (i32, i32) {
    %c0_i32 = arith.constant 0 : i32
    %c0_i32_0 = arith.constant 0 : i32
    return %arg0, %c0_i32 : i32, i32
  }
  func.func @transform_1(%arg0: i32) -> (i32, i32) {
    %c0_i32 = arith.constant 0 : i32
    %c0_i32_0 = arith.constant 0 : i32
    %c0_i32_1 = arith.constant 0 : i32
    return %c0_i32, %c0_i32_0 : i32, i32
  }
  func.func @transform_2(%arg0: i32) -> (i32, i32) {
    %c0_i32 = arith.constant 0 : i32
    %c0_i32_0 = arith.constant 0 : i32
    %c0_i32_1 = arith.constant 0 : i32
    return %c0_i32, %c0_i32_0 : i32, i32
  }
  func.func @transform_3(%arg0: i32) -> (i32, i32) {
    %c0_i32 = arith.constant 0 : i32
    %c0_i32_0 = arith.constant 0 : i32
    return %arg0, %c0_i32 : i32, i32
  }
}

</mosaic_0001>

<bundles_post_ra>
// kernel: dark_face_discriminator.8
= control target key start
LH: loop header
LB: loop body
LE: loop exit
PB: predicated region body
PF: predicated region fallthrough
CT: control target
= control target key end

     0   :  { %v379_v7 = vmov 1966171168   ;;  %v33_v9 = vlaneseq  ;;  %s506_s1 = inlined_call_operand.vmem [shape: f32[1,2,128], index: 1, kind: input, shape index: {}]   ;;  %s507_s0 = inlined_call_operand.vmem [shape: bf16[128,128], index: 0, kind: input, shape index: {}]   ;;  %s508_s2 = inlined_call_operand.vmem [shape: f32[1,128], index: 2, kind: input, shape index: {}]   ;;  %s509_s3 = inlined_call_operand.vmem [shape: f32[1,128], index: 3, kind: input, shape index: {}]   ;;  %s510_s4 = inlined_call_operand.vmem [shape: bf16[128,128], index: 4, kind: output, shape index: {}]  }
   0x1   :  { %v17_v0 = vld [vmem:[%s506_s1] sm:$0x3]  ;;  %v31_v8 = vunpack.c.l.s4 %v379_v7  ;;  %v362_v17 = vld [vmem:[%s507_s0 + $0x8] sm:$0xff]   ;;  %v363_v19 = vld [vmem:[%s507_s0 + $0x10] sm:$0xff]  }
   0x2   :  { %v19_v1 = vmul.f32 0.0078125, %v17_v0  ;;  %v34_v11 = vshrl.u32 %v33_v9, 7  ;;  %v291_v16 = vld [vmem:[%s507_s0] sm:$0xff]   ;;  %v364_v22 = vld [vmem:[%s507_s0 + $0x18] sm:$0xff]   ;;  %v296_v26 = vunpack.c.l.bf16 %v362_v17  ;;  %v366_v27 = vld [vmem:[%s507_s0 + $0x28] sm:$0xff]   ;;  %v297_v29 = vunpack.c.h.bf16 %v362_v17 }
   0x3   :  { %v32_v10 = vunpack.c.0.s8 %v31_v8  ;;  %v26_v18 = vld [vmem:[%s508_s2] sm:$0x1]  ;;  %v292_v24 = vunpack.c.l.bf16 %v291_v16  ;;  %v293_v25 = vunpack.c.h.bf16 %v291_v16  ;;  %v300_v30 = vunpack.c.l.bf16 %v363_v19  ;;  %v367_v32 = vld [vmem:[%s507_s0 + $0x30] sm:$0xff]   ;;  %v435_v33 = vld [vmem:[%s507_s0 + $0x38] sm:$0xff]  }
   0x4   :  { %v20_v2 = vmul.f32 %v19_v1, %v19_v1  ;;  %v85_v21 = vsub.s32 0, %v34_v11  ;;  %v365_v23 = vld [vmem:[%s507_s0 + $0x20] sm:$0xff]   ;;  %v301_v31 = vunpack.c.h.bf16 %v363_v19  ;;  %v304_v35 = vunpack.c.l.bf16 %v364_v22 }
   0x5   :  { %v35_v12 = vsub.s32 %v32_v10, %v34_v11  ;;  %v47_v34 = vld [vmem:[%s509_s3] sm:$0x1]  ;;  %v305_v36 = vunpack.c.h.bf16 %v364_v22  ;;  %v308_v37 = vunpack.c.l.bf16 %v365_v23  ;;  %v309_v38 = vunpack.c.h.bf16 %v365_v23 }
   0x6   :  { %v22_v3 = vrot.slane %v20_v2, 7  ;;  %v312_v41 = vunpack.c.l.bf16 %v366_v27  ;;  %v313_v42 = vunpack.c.h.bf16 %v366_v27  ;;  %v316_v43 = vunpack.c.l.bf16 %v367_v32 }
   0x7   :  { %v317_v44 = vunpack.c.h.bf16 %v367_v32  ;;  %v320_v45 = vunpack.c.l.bf16 %v435_v33  ;;  %v321_v46 = vunpack.c.h.bf16 %v435_v33 }
   0x8   :  { %v24_v4 = vsub.f32 %v19_v1, %v22_v3 }
   0xa   :  { %v25_v5 = vmax.f32 %v24_v4, 0.0 }
   0xc   :  { %v27_v6 = vadd.f32 1e-05, %v25_v5 }
   0xe   :  { %377 = vrsqrt.f32 %v27_v6 }
  0x1b   :  { %v378_v13 = vpop.eup %377 }
  0x1c   :  { %v36_v14 = vrot.slane %v378_v13, %v35_v12 }
  0x1e   :  { %v37_v15 = vcombine.high %v36_v14, %v36_v14 }
  0x20   :  { %v44_v20 = vrot.slane %v37_v15, %v35_v12 }
  0x22   :  { %v46_v28 = vmul.f32 %v44_v20, %v26_v18 }
  0x24   :  { %v48_v39 = vmul.f32 %v46_v28, %v19_v1  ;;  %v440_v40 = vrot.slane %v46_v28, %v85_v21 }
  0x26   :  { %v49_v47 = vsub.f32 %v47_v34, %v48_v39  ;;  %v88_v48 = vmul.f32 %v292_v24, %v440_v40  ;;  %v89_v49 = vmul.f32 %v293_v25, %v440_v40  ;;  %v90_v50 = vmul.f32 %v296_v26, %v440_v40 }
  0x27   :  { %v91_v51 = vmul.f32 %v297_v29, %v440_v40  ;;  %v92_v52 = vmul.f32 %v300_v30, %v440_v40  ;;  %v93_v53 = vmul.f32 %v301_v31, %v440_v40  ;;  %v94_v54 = vmul.f32 %v304_v35, %v440_v40 }
  0x28   :  { %v451_v55 = vrot.slane %v49_v47, %v85_v21  ;;  %v95_v56 = vmul.f32 %v305_v36, %v440_v40  ;;  %v96_v57 = vmul.f32 %v308_v37, %v440_v40  ;;  %v97_v58 = vmul.f32 %v309_v38, %v440_v40 }
  0x29   :  { %v98_v59 = vmul.f32 %v312_v41, %v440_v40  ;;  %v99_v60 = vmul.f32 %v313_v42, %v440_v40  ;;  %v100_v61 = vmul.f32 %v316_v43, %v440_v40  ;;  %v101_v62 = vmul.f32 %v317_v44, %v440_v40 }
  0x2a   :  { %v110_v63 = vadd.f32 %v451_v55, %v88_v48  ;;  %v111_v0 = vadd.f32 %v451_v55, %v89_v49  ;;  %v112_v1 = vadd.f32 %v451_v55, %v90_v50  ;;  %v113_v2 = vadd.f32 %v451_v55, %v91_v51 }
  0x2b   :  { %v114_v3 = vadd.f32 %v451_v55, %v92_v52  ;;  %v115_v4 = vadd.f32 %v451_v55, %v93_v53  ;;  %v116_v5 = vadd.f32 %v451_v55, %v94_v54  ;;  %v117_v6 = vadd.f32 %v451_v55, %v95_v56 }
  0x2c   :  { %vm126_vm0 = vcmp.gt.f32.partialorder %v110_v63, 0.0  ;;  %vm127_vm1 = vcmp.gt.f32.partialorder %v111_v0, 0.0  ;;  %v142_v7 = vmul.f32 0.2, %v110_v63  ;;  %v143_v8 = vmul.f32 0.2, %v111_v0 }
  0x2d   :  { %vm128_vm2 = vcmp.gt.f32.partialorder %v112_v1, 0.0  ;;  %vm129_vm3 = vcmp.gt.f32.partialorder %v113_v2, 0.0  ;;  %v144_v9 = vmul.f32 0.2, %v112_v1  ;;  %v145_v10 = vmul.f32 0.2, %v113_v2 }
  0x2e   :  { %v158_v11 = vsel %vm126_vm0, %v110_v63, %v142_v7  ;;  %v159_v12 = vsel %vm127_vm1, %v111_v0, %v143_v8  ;;  %vm130_vm4 = vcmp.gt.f32.partialorder %v114_v3, 0.0  ;;  %vm131_vm5 = vcmp.gt.f32.partialorder %v115_v4, 0.0 }
  0x2f   :  { %v325_v13 = vpack.c.bf16 %v159_v12, %v158_v11  ;;  %v160_v14 = vsel %vm128_vm2, %v112_v1, %v144_v9  ;;  %v161_v15 = vsel %vm129_vm3, %v113_v2, %v145_v10  ;;  %v146_v16 = vmul.f32 0.2, %v114_v3 }
  0x30   :  { %v330_v17 = vpack.c.bf16 %v161_v15, %v160_v14  ;;  %v147_v18 = vmul.f32 0.2, %v115_v4  ;;  %vm132_vm6 = vcmp.gt.f32.partialorder %v116_v5, 0.0  ;;  %vm133_vm7 = vcmp.gt.f32.partialorder %v117_v6, 0.0 }
  0x31   :  { %326 = vst [vmem:[%s510_s4] sm:$0xff] %v325_v13   ;;  %v162_v19 = vsel %vm130_vm4, %v114_v3, %v146_v16  ;;  %v148_v20 = vmul.f32 0.2, %v116_v5  ;;  %v149_v21 = vmul.f32 0.2, %v117_v6  ;;  %v118_v22 = vadd.f32 %v451_v55, %v96_v57 }
  0x32   :  { %369 = vst [vmem:[%s510_s4 + $0x8] sm:$0xff] %v330_v17   ;;  %v163_v23 = vsel %vm131_vm5, %v115_v4, %v147_v18  ;;  %v119_v24 = vadd.f32 %v451_v55, %v97_v58  ;;  %v120_v25 = vadd.f32 %v451_v55, %v98_v59  ;;  %v121_v26 = vadd.f32 %v451_v55, %v99_v60 }
  0x33   :  { %v335_v27 = vpack.c.bf16 %v163_v23, %v162_v19  ;;  %v164_v28 = vsel %vm132_vm6, %v116_v5, %v148_v20  ;;  %v165_v29 = vsel %vm133_vm7, %v117_v6, %v149_v21  ;;  %vm134_vm8 = vcmp.gt.f32.partialorder %v118_v22, 0.0 }
  0x34   :  { %v340_v30 = vpack.c.bf16 %v165_v29, %v164_v28  ;;  %vm135_vm9 = vcmp.gt.f32.partialorder %v119_v24, 0.0  ;;  %v150_v31 = vmul.f32 0.2, %v118_v22  ;;  %v151_v32 = vmul.f32 0.2, %v119_v24 }
  0x35   :  { %370 = vst [vmem:[%s510_s4 + $0x10] sm:$0xff] %v335_v27   ;;  %vm136_vm10 = vcmp.gt.f32.partialorder %v120_v25, 0.0  ;;  %vm137_vm11 = vcmp.gt.f32.partialorder %v121_v26, 0.0  ;;  %v152_v34 = vmul.f32 0.2, %v120_v25  ;;  %v122_v38 = vadd.f32 %v451_v55, %v100_v61 }
  0x36   :  { %v153_v35 = vmul.f32 0.2, %v121_v26  ;;  %371 = vst [vmem:[%s510_s4 + $0x18] sm:$0xff] %v340_v30   ;;  %v166_v36 = vsel %vm134_vm8, %v118_v22, %v150_v31  ;;  %v167_v37 = vsel %vm135_vm9, %v119_v24, %v151_v32  ;;  %v123_v39 = vadd.f32 %v451_v55, %v101_v62 }
  0x37   :  { %v345_v41 = vpack.c.bf16 %v167_v37, %v166_v36  ;;  %v168_v42 = vsel %vm136_vm10, %v120_v25, %v152_v34  ;;  %v102_v44 = vmul.f32 %v320_v45, %v440_v40  ;;  %vm138_vm12 = vcmp.gt.f32.partialorder %v122_v38, 0.0 }
  0x38   :  { %v169_v43 = vsel %vm137_vm11, %v121_v26, %v153_v35  ;;  %vm139_vm13 = vcmp.gt.f32.partialorder %v123_v39, 0.0  ;;  %v154_v48 = vmul.f32 0.2, %v122_v38  ;;  %v155_v49 = vmul.f32 0.2, %v123_v39 }
  0x39   :  { %v350_v47 = vpack.c.bf16 %v169_v43, %v168_v42  ;;  %372 = vst [vmem:[%s510_s4 + $0x20] sm:$0xff] %v345_v41   ;;  %v103_v50 = vmul.f32 %v321_v46, %v440_v40  ;;  %v124_v51 = vadd.f32 %v451_v55, %v102_v44 }
  0x3a   :  { %v170_v45 = vsel %vm138_vm12, %v122_v38, %v154_v48  ;;  %v171_v52 = vsel %vm139_vm13, %v123_v39, %v155_v49 }
  0x3b   :  { %373 = vst [vmem:[%s510_s4 + $0x28] sm:$0xff] %v350_v47   ;;  %v125_v53 = vadd.f32 %v451_v55, %v103_v50  ;;  %vm140_vm14 = vcmp.gt.f32.partialorder %v124_v51, 0.0  ;;  %v156_v54 = vmul.f32 0.2, %v124_v51  ;;  %v355_v56 = vpack.c.bf16 %v171_v52, %v170_v45 }
  0x3d   :  { %vm141_vm15 = vcmp.gt.f32.partialorder %v125_v53, 0.0  ;;  %v157_v57 = vmul.f32 0.2, %v125_v53  ;;  %v172_v58 = vsel %vm140_vm14, %v124_v51, %v156_v54  ;;  %374 = vst [vmem:[%s510_s4 + $0x30] sm:$0xff] %v355_v56  }
  0x3f   :  { %v173_v33 = vsel %vm141_vm15, %v125_v53, %v157_v57 }
  0x40   :  { %v360_v40 = vpack.c.bf16 %v173_v33, %v172_v58 }
  0x42   :  { %375 = vst [vmem:[%s510_s4 + $0x38] sm:$0xff] %v360_v40  }

// kernel: dark_face_discriminator.7
= control target key start
LH: loop header
LB: loop body
LE: loop exit
PB: predicated region body
PF: predicated region fallthrough
CT: control target
= control target key end

     0   :  { %s660_s1 = inlined_call_operand.vmem [shape: bf16[128,128], index: 1, kind: input, shape index: {}]   ;;  %s661_s0 = inlined_call_operand.vmem [shape: bf16[128,128], index: 0, kind: input, shape index: {}]   ;;  %s662_s2 = inlined_call_operand.vmem [shape: bf16[128,128], index: 2, kind: output, shape index: {0}]   ;;  %s663_s3 = inlined_call_operand.vmem [shape: f32[1,2,128], index: 3, kind: output, shape index: {1}]  }
   0x1   :  { %v549_v0 = vld [vmem:[%s660_s1 + $0x38] sm:$0xff]   ;;  %v550_v1 = vld [vmem:[%s660_s1 + $0x30] sm:$0xff]   ;;  %v551_v2 = vld [vmem:[%s660_s1 + $0x28] sm:$0xff]  }
   0x2   :  { %501 = vmatprep.subr.bf16.mxu0 %v549_v0  ;;  %533 = vmatprep.subr.bf16.mxu1 %v549_v0  ;;  %v552_v3 = vld [vmem:[%s660_s1 + $0x20] sm:$0xff]   ;;  %v553_v5 = vld [vmem:[%s660_s1 + $0x18] sm:$0xff]   ;;  %v554_v7 = vld [vmem:[%s660_s1 + $0x10] sm:$0xff]  }
   0x3   :  { %502 = vmatpush3.bf16.msra.mxu0 %v549_v0  ;;  %541 = vmatpush3.bf16.msra.mxu1 %v549_v0  ;;  %v557_v4 = vld [vmem:[%s661_s0] sm:$0xff]   ;;  %v555_v8 = vld [vmem:[%s660_s1 + $0x8] sm:$0xff]   ;;  %v559_v12 = vld [vmem:[%s661_s0 + $0x10] sm:$0xff]  }
   0x4   :  { %503 = vmatprep.subr.bf16.mxu0 %v550_v1  ;;  %534 = vmatprep.subr.bf16.mxu1 %v550_v1  ;;  %v561_v6 = vld [vmem:[%s661_s0 + $0x20] sm:$0xff]   ;;  %v558_v10 = vld [vmem:[%s661_s0 + $0x8] sm:$0xff]   ;;  %v563_v13 = vld [vmem:[%s661_s0 + $0x30] sm:$0xff]  }
   0x5   :  { %517 = vmatprep.mubr.bf16.mxu0 %v557_v4  ;;  %525 = vmatprep.mubr.bf16.mxu1 %v561_v6  ;;  %v556_v9 = vld [vmem:[%s660_s1] sm:$0xff]   ;;  %v562_v11 = vld [vmem:[%s661_s0 + $0x28] sm:$0xff]   ;;  %v560_v14 = vld [vmem:[%s661_s0 + $0x18] sm:$0xff]  }
   0x6   :  { %v564_v15 = vld [vmem:[%s661_s0 + $0x38] sm:$0xff]  }
   0x7   :  { %504 = vmatpush3.bf16.msra.mxu0 %v550_v1  ;;  %542 = vmatpush3.bf16.msra.mxu1 %v550_v1 }
   0x8   :  { %505 = vmatprep.subr.bf16.mxu0 %v551_v2  ;;  %535 = vmatprep.subr.bf16.mxu1 %v551_v2 }
   0xb   :  { %506 = vmatpush3.bf16.msra.mxu0 %v551_v2  ;;  %543 = vmatpush3.bf16.msra.mxu1 %v551_v2 }
   0xc   :  { %507 = vmatprep.subr.bf16.mxu0 %v552_v3  ;;  %536 = vmatprep.subr.bf16.mxu1 %v552_v3 }
   0xf   :  { %508 = vmatpush3.bf16.msra.mxu0 %v552_v3  ;;  %544 = vmatpush3.bf16.msra.mxu1 %v552_v3 }
  0x10   :  { %509 = vmatprep.subr.bf16.mxu0 %v553_v5  ;;  %537 = vmatprep.subr.bf16.mxu1 %v553_v5 }
  0x13   :  { %510 = vmatpush3.bf16.msra.mxu0 %v553_v5  ;;  %545 = vmatpush3.bf16.msra.mxu1 %v553_v5 }
  0x14   :  { %511 = vmatprep.subr.bf16.mxu0 %v554_v7  ;;  %538 = vmatprep.subr.bf16.mxu1 %v554_v7 }
  0x17   :  { %512 = vmatpush3.bf16.msra.mxu0 %v554_v7  ;;  %546 = vmatpush3.bf16.msra.mxu1 %v554_v7 }
  0x18   :  { %513 = vmatprep.subr.bf16.mxu0 %v555_v8  ;;  %539 = vmatprep.subr.bf16.mxu1 %v555_v8 }
  0x1b   :  { %514 = vmatpush3.bf16.msra.mxu0 %v555_v8  ;;  %547 = vmatpush3.bf16.msra.mxu1 %v555_v8 }
  0x1c   :  { %515 = vmatprep.subr.bf16.mxu0 %v556_v9  ;;  %540 = vmatprep.subr.bf16.mxu1 %v556_v9 }
  0x1f   :  { %516 = vmatpush3.bf16.msra.mxu0 %v556_v9  ;;  %548 = vmatpush3.bf16.msra.mxu1 %v556_v9 }
  0x22   :  { %518 = vmatmul.mubr.bf16.vlgmr.msra.gmra.mxu0 %v558_v10  ;;  %526 = vmatmul.mubr.bf16.vlgmr.msra.gmra.mxu1 %v562_v11 }
  0x23   :  { %521 = vmatprep.mubr.bf16.mxu0 %v559_v12  ;;  %529 = vmatprep.mubr.bf16.mxu1 %v563_v13 }
  0x2a   :  { %522 = vmatmul.mubr.bf16.gmra.mxu0 %v560_v14  ;;  %530 = vmatmul.mubr.bf16.gmra.mxu1 %v564_v15 }
  0xe2   :  { %v519_v16 = vpop.f32.mrf.mxu0  ;;  %v527_v17 = vpop.f32.mrf.mxu1 }
  0xe3   :  { %v342_v33 = vmul.f32 %v519_v16, %v519_v16  ;;  %v350_v3 = vmul.f32 %v527_v17, %v527_v17 }
  0xe4   :  { %v176_v18 = vpop.f32.mrf.mxu0  ;;  %v208_v19 = vpop.f32.mrf.mxu1 }
  0xe5   :  { %v340_v24 = vmul.f32 %v176_v18, %v176_v18  ;;  %v348_v61 = vmul.f32 %v208_v19, %v208_v19 }
  0xe6   :  { %v520_v20 = vpop.f32.mrf.mxu0  ;;  %v528_v21 = vpop.f32.mrf.mxu1 }
  0xe7   :  { %v446_v22 = vpack.c.bf16 %v520_v20, %v519_v16  ;;  %v466_v23 = vpack.c.bf16 %v528_v21, %v527_v17  ;;  %v343_v38 = vmul.f32 %v520_v20, %v520_v20  ;;  %v351_v6 = vmul.f32 %v528_v21, %v528_v21 }
  0xe8   :  { %v179_v25 = vpop.f32.mrf.mxu0  ;;  %v211_v26 = vpop.f32.mrf.mxu1 }
  0xe9   :  { %478 = vst [vmem:[%s662_s2 + $0x8] sm:$0xff] %v446_v22   ;;  %v441_v27 = vpack.c.bf16 %v179_v25, %v176_v18  ;;  %v319_v28 = vadd.f32 %v179_v25, %v176_v18  ;;  %v341_v29 = vmul.f32 %v179_v25, %v179_v25  ;;  %482 = vst [vmem:[%s662_s2 + $0x28] sm:$0xff] %v466_v23  }
  0xea   :  { %v461_v30 = vpack.c.bf16 %v211_v26, %v208_v19  ;;  %v523_v31 = vpop.f32.mrf.mxu0  ;;  %v531_v32 = vpop.f32.mrf.mxu1  ;;  %v349_v1 = vmul.f32 %v211_v26, %v211_v26 }
  0xeb   :  { %442 = vst [vmem:[%s662_s2] sm:$0xff] %v441_v27   ;;  %v320_v34 = vadd.f32 %v519_v16, %v319_v28  ;;  %v356_v35 = vadd.f32 %v341_v29, %v340_v24  ;;  %v346_v55 = vmul.f32 %v523_v31, %v523_v31  ;;  %v354_v15 = vmul.f32 %v531_v32, %v531_v32 }
  0xec   :  { %481 = vst [vmem:[%s662_s2 + $0x20] sm:$0xff] %v461_v30   ;;  %v192_v36 = vpop.f32.mrf.mxu0  ;;  %v224_v37 = vpop.f32.mrf.mxu1 }
  0xed   :  { %v357_v39 = vadd.f32 %v356_v35, %v342_v33  ;;  %v321_v40 = vadd.f32 %v520_v20, %v320_v34  ;;  %v344_v44 = vmul.f32 %v192_v36, %v192_v36  ;;  %v352_v10 = vmul.f32 %v224_v37, %v224_v37 }
  0xee   :  { %v524_v41 = vpop.f32.mrf.mxu0  ;;  %v532_v42 = vpop.f32.mrf.mxu1 }
  0xef   :  { %v322_v43 = vadd.f32 %v321_v40, %v192_v36  ;;  %v358_v45 = vadd.f32 %v357_v39, %v343_v38  ;;  %v456_v46 = vpack.c.bf16 %v524_v41, %v523_v31  ;;  %v476_v48 = vpack.c.bf16 %v532_v42, %v531_v32 }
  0xf0   :  { %v195_v47 = vpop.f32.mrf.mxu0  ;;  %v227_v49 = vpop.f32.mrf.mxu1  ;;  %v347_v58 = vmul.f32 %v524_v41, %v524_v41  ;;  %v355_v20 = vmul.f32 %v532_v42, %v532_v42 }
  0xf1   :  { %v359_v50 = vadd.f32 %v358_v45, %v344_v44  ;;  %480 = vst [vmem:[%s662_s2 + $0x18] sm:$0xff] %v456_v46   ;;  %v451_v51 = vpack.c.bf16 %v195_v47, %v192_v36  ;;  %v323_v52 = vadd.f32 %v322_v43, %v195_v47  ;;  %v345_v53 = vmul.f32 %v195_v47, %v195_v47 }
  0xf2   :  { %484 = vst [vmem:[%s662_s2 + $0x38] sm:$0xff] %v476_v48   ;;  %v471_v54 = vpack.c.bf16 %v227_v49, %v224_v37  ;;  %v353_v14 = vmul.f32 %v227_v49, %v227_v49 }
  0xf3   :  { %479 = vst [vmem:[%s662_s2 + $0x10] sm:$0xff] %v451_v51   ;;  %v324_v56 = vadd.f32 %v523_v31, %v323_v52  ;;  %v360_v57 = vadd.f32 %v359_v50, %v345_v53 }
  0xf4   :  { %483 = vst [vmem:[%s662_s2 + $0x30] sm:$0xff] %v471_v54  }
  0xf5   :  { %v325_v59 = vadd.f32 %v524_v41, %v324_v56  ;;  %v361_v60 = vadd.f32 %v360_v57, %v346_v55 }
  0xf7   :  { %v362_v62 = vadd.f32 %v361_v60, %v347_v58  ;;  %v326_v63 = vadd.f32 %v325_v59, %v208_v19 }
  0xf9   :  { %v327_v0 = vadd.f32 %v326_v63, %v211_v26  ;;  %v363_v2 = vadd.f32 %v362_v62, %v348_v61  ;;  %v377_v26 = vlaneseq }
  0xfb   :  { %v328_v4 = vadd.f32 %v527_v17, %v327_v0  ;;  %v364_v5 = vadd.f32 %v363_v2, %v349_v1  ;;  %v378_v30 = vshrl.u32 %v377_v26, 7 }
  0xfd   :  { %v365_v7 = vadd.f32 %v364_v5, %v350_v3  ;;  %v329_v8 = vadd.f32 %v528_v21, %v328_v4  ;;  %vm379_vm0 = vcmp.eq.s32.totalorder %v378_v30, 0 }
  0xff   :  { %v330_v9 = vadd.f32 %v329_v8, %v224_v37  ;;  %v366_v11 = vadd.f32 %v365_v7, %v351_v6 }
 0x101   :  { %v367_v12 = vadd.f32 %v366_v11, %v352_v10  ;;  %v331_v13 = vadd.f32 %v330_v9, %v227_v49 }
 0x103   :  { %v332_v16 = vadd.f32 %v531_v32, %v331_v13  ;;  %v368_v18 = vadd.f32 %v367_v12, %v353_v14 }
 0x105   :  { %v333_v19 = vadd.f32 %v532_v42, %v332_v16  ;;  %v369_v22 = vadd.f32 %v368_v18, %v354_v15 }
 0x107   :  { %v334_v23 = vrot.slane %v333_v19, 4  ;;  %v370_v24 = vadd.f32 %v369_v22, %v355_v20 }
 0x109   :  { %v335_v25 = vadd.f32 %v334_v23, %v333_v19  ;;  %v371_v17 = vrot.slane %v370_v24, 4 }
 0x10b   :  { %v336_v27 = vrot.slane %v335_v25, 2  ;;  %v372_v28 = vadd.f32 %v371_v17, %v370_v24 }
 0x10d   :  { %v337_v21 = vadd.f32 %v336_v27, %v335_v25  ;;  %v373_v29 = vrot.slane %v372_v28, 2 }
 0x10f   :  { %v338_v31 = vrot.slane %v337_v21, 1  ;;  %v374_v33 = vadd.f32 %v373_v29, %v372_v28 }
 0x111   :  { %v375_v34 = vrot.slane %v374_v33, 1  ;;  %v339_v35 = vadd.f32 %v338_v31, %v337_v21 }
 0x113   :  { %v376_v32 = vadd.f32 %v375_v34, %v374_v33 }
 0x115   :  { %v380_v36 = vsel %vm379_vm0, %v339_v35, %v376_v32 }
 0x116   :  { %381 = vst [vmem:[%s663_s3] sm:$0x3] %v380_v36 }

// kernel: dark_face_discriminator.9
= control target key start
LH: loop header
LB: loop body
LE: loop exit
PB: predicated region body
PF: predicated region fallthrough
CT: control target
= control target key end

     0   :  { %s779_s1 = inlined_call_operand.vmem [shape: bf16[512,128], index: 1, kind: input, shape index: {}]   ;;  %s780_s0 = inlined_call_operand.vmem [shape: bf16[32,512], index: 0, kind: input, shape index: {}]   ;;  %s781_s2 = inlined_call_operand.vmem [shape: bf16[32,128], index: 2, kind: output, shape index: {0}]   ;;  %s782_s3 = inlined_call_operand.vmem [shape: f32[1,2,128], index: 3, kind: output, shape index: {1}]  }
   0x1   :  { %v586_v0 = vld [vmem:[%s779_s1 + $0x78] sm:$0xff]   ;;  %v590_v4 = vld [vmem:[%s779_s1 + $0x70] sm:$0xff]   ;;  %v594_v8 = vld [vmem:[%s779_s1 + $0x68] sm:$0xff]  }
   0x2   :  { %v587_v1 = vld [vmem:[%s779_s1 + $0xf8] sm:$0xff]   ;;  %530 = vmatprep.subr.bf16.mxu0 %v586_v0  ;;  %v591_v5 = vld [vmem:[%s779_s1 + $0xf0] sm:$0xff]   ;;  %v595_v9 = vld [vmem:[%s779_s1 + $0xe8] sm:$0xff]  }
   0x3   :  { %v588_v2 = vld [vmem:[%s779_s1 + $0x38] sm:$0xff]   ;;  %558 = vmatprep.subr.bf16.mxu1 %v587_v1  ;;  %v592_v6 = vld [vmem:[%s779_s1 + $0x30] sm:$0xff]   ;;  %v596_v10 = vld [vmem:[%s779_s1 + $0x28] sm:$0xff]  }
   0x4   :  { %v589_v3 = vld [vmem:[%s779_s1 + $0xb8] sm:$0xff]   ;;  %531 = vmatpush3.bf16.msra.mxu0 %v588_v2  ;;  %v593_v7 = vld [vmem:[%s779_s1 + $0xb0] sm:$0xff]   ;;  %v597_v11 = vld [vmem:[%s779_s1 + $0xa8] sm:$0xff]  }
   0x5   :  { %559 = vmatpush3.bf16.msra.mxu1 %v589_v3  ;;  %532 = vmatprep.subr.bf16.mxu0 %v590_v4  ;;  %v598_v12 = vld [vmem:[%s779_s1 + $0x60] sm:$0xff]   ;;  %v602_v16 = vld [vmem:[%s779_s1 + $0x58] sm:$0xff]   ;;  %v606_v20 = vld [vmem:[%s779_s1 + $0x50] sm:$0xff]  }
   0x6   :  { %560 = vmatprep.subr.bf16.mxu1 %v591_v5  ;;  %v599_v13 = vld [vmem:[%s779_s1 + $0xe0] sm:$0xff]   ;;  %v603_v17 = vld [vmem:[%s779_s1 + $0xd8] sm:$0xff]   ;;  %v607_v21 = vld [vmem:[%s779_s1 + $0xd0] sm:$0xff]  }
   0x7   :  { %v600_v14 = vld [vmem:[%s779_s1 + $0x20] sm:$0xff]   ;;  %v604_v18 = vld [vmem:[%s779_s1 + $0x18] sm:$0xff]   ;;  %v608_v22 = vld [vmem:[%s779_s1 + $0x10] sm:$0xff]  }
   0x8   :  { %533 = vmatpush3.bf16.msra.mxu0 %v592_v6  ;;  %v601_v15 = vld [vmem:[%s779_s1 + $0xa0] sm:$0xff]   ;;  %v605_v19 = vld [vmem:[%s779_s1 + $0x98] sm:$0xff]   ;;  %v609_v23 = vld [vmem:[%s779_s1 + $0x90] sm:$0xff]  }
   0x9   :  { %561 = vmatpush3.bf16.msra.mxu1 %v593_v7  ;;  %534 = vmatprep.subr.bf16.mxu0 %v594_v8  ;;  %v610_v24 = vld [vmem:[%s779_s1 + $0x48] sm:$0xff]   ;;  %v614_v28 = vld [vmem:[%s779_s1 + $0x40] sm:$0xff]  }
   0xa   :  { %562 = vmatprep.subr.bf16.mxu1 %v595_v9  ;;  %v611_v25 = vld [vmem:[%s779_s1 + $0xc8] sm:$0xff]   ;;  %v615_v29 = vld [vmem:[%s779_s1 + $0xc0] sm:$0xff]  }
   0xb   :  { %v612_v26 = vld [vmem:[%s779_s1 + $0x8] sm:$0xff]   ;;  %v616_v30 = vld [vmem:[%s779_s1] sm:$0xff]  }
   0xc   :  { %535 = vmatpush3.bf16.msra.mxu0 %v596_v10  ;;  %v613_v27 = vld [vmem:[%s779_s1 + $0x88] sm:$0xff]   ;;  %v617_v31 = vld [vmem:[%s779_s1 + $0x80] sm:$0xff]  }
   0xd   :  { %563 = vmatpush3.bf16.msra.mxu1 %v597_v11  ;;  %536 = vmatprep.subr.bf16.mxu0 %v598_v12  ;;  %v618_v32 = vld [vmem:[%s780_s0] ss:$16 sps:$4 sm:$0xff]   ;;  %v620_v33 = vld [vmem:[%s780_s0 + $0x4] ss:$16 sps:$4 sm:$0xff]   ;;  %v621_v34 = vld [vmem:[%s780_s0 + $0x8] ss:$16 sps:$4 sm:$0xff]  }
   0xe   :  { %564 = vmatprep.subr.bf16.mxu1 %v599_v13  ;;  %v623_v35 = vld [vmem:[%s780_s0 + $0xc] ss:$16 sps:$4 sm:$0xff]   ;;  %350 = vmatprep.mubr.bf16.mxu0 %v620_v33  ;;  %v624_v36 = vld [vmem:[%s780_s0 + $0x24] ss:$16 sps:$4 sm:$0xff]   ;;  %v628_v38 = vld [vmem:[%s780_s0 + $0x20] ss:$16 sps:$4 sm:$0xff]  }
   0xf   :  { %399 = vmatprep.mubr.bf16.mxu1 %v623_v35  ;;  %v626_v37 = vld [vmem:[%s780_s0 + $0x2c] ss:$16 sps:$4 sm:$0xff]   ;;  %v629_v39 = vld [vmem:[%s780_s0 + $0x28] ss:$16 sps:$4 sm:$0xff]  }
  0x10   :  { %537 = vmatpush3.bf16.msra.mxu0 %v600_v14 }
  0x11   :  { %565 = vmatpush3.bf16.msra.mxu1 %v601_v15  ;;  %538 = vmatprep.subr.bf16.mxu0 %v602_v16 }
  0x12   :  { %566 = vmatprep.subr.bf16.mxu1 %v603_v17 }
  0x14   :  { %539 = vmatpush3.bf16.msra.mxu0 %v604_v18 }
  0x15   :  { %567 = vmatpush3.bf16.msra.mxu1 %v605_v19  ;;  %540 = vmatprep.subr.bf16.mxu0 %v606_v20  ;;  %v458_v19 = vlaneseq }
  0x16   :  { %568 = vmatprep.subr.bf16.mxu1 %v607_v21 }
  0x18   :  { %541 = vmatpush3.bf16.msra.mxu0 %v608_v22 }
  0x19   :  { %569 = vmatpush3.bf16.msra.mxu1 %v609_v23  ;;  %542 = vmatprep.subr.bf16.mxu0 %v610_v24  ;;  %v459_v24 = vshrl.u32 %v458_v19, 7 }
  0x1a   :  { %570 = vmatprep.subr.bf16.mxu1 %v611_v25 }
  0x1b   :  { %vm460_vm0 = vcmp.eq.s32.totalorder %v459_v24, 0 }
  0x1c   :  { %543 = vmatpush3.bf16.msra.mxu0 %v612_v26 }
  0x1d   :  { %571 = vmatpush3.bf16.msra.mxu1 %v613_v27  ;;  %544 = vmatprep.subr.bf16.mxu0 %v614_v28 }
  0x1e   :  { %572 = vmatprep.subr.bf16.mxu1 %v615_v29 }
  0x20   :  { %545 = vmatpush3.bf16.msra.mxu0 %v616_v30 }
  0x21   :  { %573 = vmatpush3.bf16.msra.mxu1 %v617_v31 }
  0x23   :  { %351 = vmatmul.mubr.bf16.vlgmr.msra.gmra.mxu0 %v618_v32 }
  0x24   :  { %400 = vmatmul.mubr.bf16.vlgmr.msra.gmra.mxu1 %v621_v34  ;;  %358 = vmatprep.mubr.bf16.mxu0 %v624_v36 }
  0x25   :  { %407 = vmatprep.mubr.bf16.mxu1 %v626_v37 }
  0x2b   :  { %359 = vmatmul.mubr.bf16.gmra.mxu0 %v628_v38 }
  0x2c   :  { %408 = vmatmul.mubr.bf16.gmra.mxu1 %v629_v39 }
  0xe3   :  { %v546_v40 = vpop.f32.mrf.mxu0 }
  0xe4   :  { %v574_v41 = vpop.f32.mrf.mxu1 }
  0xe5   :  { %v547_v42 = vpop.f32.mrf.mxu0 }
  0xe6   :  { %v575_v43 = vpop.f32.mrf.mxu1  ;;  %v548_v46 = vadd.f32 %v547_v42, %v546_v40 }
  0xe7   :  { %v549_v44 = vpop.f32.mrf.mxu0  ;;  %v576_v47 = vadd.f32 %v575_v43, %v574_v41 }
  0xe8   :  { %v577_v45 = vpop.f32.mrf.mxu1 }
  0xe9   :  { %v550_v48 = vpop.f32.mrf.mxu0  ;;  %v402_v54 = vadd.f32 %v576_v47, %v548_v46 }
  0xea   :  { %v551_v49 = vadd.f32 %v550_v48, %v549_v44  ;;  %v578_v50 = vpop.f32.mrf.mxu1 }
  0xeb   :  { %v579_v51 = vadd.f32 %v578_v50, %v577_v45  ;;  %v552_v52 = vpop.f32.mrf.mxu0  ;;  %v445_v4 = vmul.f32 %v402_v54, %v402_v54 }
  0xec   :  { %v580_v53 = vpop.f32.mrf.mxu1 }
  0xed   :  { %v405_v55 = vadd.f32 %v579_v51, %v551_v49  ;;  %v553_v56 = vpop.f32.mrf.mxu0 }
  0xee   :  { %v554_v57 = vadd.f32 %v553_v56, %v552_v52  ;;  %v581_v58 = vpop.f32.mrf.mxu1 }
  0xef   :  { %v522_v59 = vpack.c.bf16 %v405_v55, %v402_v54  ;;  %v582_v60 = vadd.f32 %v581_v58, %v580_v53  ;;  %v555_v61 = vpop.f32.mrf.mxu0  ;;  %v446_v63 = vmul.f32 %v405_v55, %v405_v55  ;;  %v436_v5 = vadd.f32 %v405_v55, %v402_v54 }
  0xf0   :  { %v583_v62 = vpop.f32.mrf.mxu1 }
  0xf1   :  { %523 = vst [vmem:[%s781_s2] sm:$0xff] %v522_v59   ;;  %v410_v0 = vadd.f32 %v582_v60, %v554_v57  ;;  %v556_v1 = vpop.f32.mrf.mxu0  ;;  %v449_v8 = vadd.f32 %v446_v63, %v445_v4 }
  0xf2   :  { %v557_v2 = vadd.f32 %v556_v1, %v555_v61  ;;  %v584_v3 = vpop.f32.mrf.mxu1 }
  0xf3   :  { %v447_v6 = vmul.f32 %v410_v0, %v410_v0  ;;  %v585_v7 = vadd.f32 %v584_v3, %v583_v62  ;;  %v437_v9 = vadd.f32 %v436_v5, %v410_v0 }
  0xf5   :  { %v413_v10 = vadd.f32 %v585_v7, %v557_v2  ;;  %v450_v11 = vadd.f32 %v449_v8, %v447_v6 }
  0xf7   :  { %v527_v12 = vpack.c.bf16 %v413_v10, %v410_v0  ;;  %v438_v13 = vadd.f32 %v437_v9, %v413_v10  ;;  %v448_v14 = vmul.f32 %v413_v10, %v413_v10 }
  0xf9   :  { %529 = vst [vmem:[%s781_s2 + $0x8] sm:$0xff] %v527_v12   ;;  %v439_v15 = vrot.slane %v438_v13, 4  ;;  %v451_v16 = vadd.f32 %v450_v11, %v448_v14 }
  0xfb   :  { %v440_v17 = vadd.f32 %v439_v15, %v438_v13  ;;  %v452_v18 = vrot.slane %v451_v16, 4 }
  0xfd   :  { %v441_v20 = vrot.slane %v440_v17, 2  ;;  %v453_v21 = vadd.f32 %v452_v18, %v451_v16 }
  0xff   :  { %v442_v22 = vadd.f32 %v441_v20, %v440_v17  ;;  %v454_v23 = vrot.slane %v453_v21, 2 }
 0x101   :  { %v443_v25 = vrot.slane %v442_v22, 1  ;;  %v455_v26 = vadd.f32 %v454_v23, %v453_v21 }
 0x103   :  { %v456_v27 = vrot.slane %v455_v26, 1  ;;  %v444_v28 = vadd.f32 %v443_v25, %v442_v22 }
 0x105   :  { %v457_v29 = vadd.f32 %v456_v27, %v455_v26 }
 0x107   :  { %v461_v30 = vsel %vm460_vm0, %v444_v28, %v457_v29 }
 0x108   :  { %462 = vst [vmem:[%s782_s3] sm:$0x3] %v461_v30 }

// kernel: dark_face_discriminator.10
= control target key start
LH: loop header
LB: loop body
LE: loop exit
PB: predicated region body
PF: predicated region fallthrough
CT: control target
= control target key end

     0   :  { %v145_v7 = vmov 1966171168   ;;  %v33_v9 = vlaneseq  ;;  %s192_s1 = inlined_call_operand.vmem [shape: f32[1,2,128], index: 1, kind: input, shape index: {}]   ;;  %s193_s0 = inlined_call_operand.vmem [shape: bf16[32,128], index: 0, kind: input, shape index: {}]   ;;  %s194_s2 = inlined_call_operand.vmem [shape: f32[1,128], index: 2, kind: input, shape index: {}]   ;;  %s195_s3 = inlined_call_operand.vmem [shape: f32[1,128], index: 3, kind: input, shape index: {}]   ;;  %s196_s4 = inlined_call_operand.vmem [shape: bf16[32,128], index: 4, kind: output, shape index: {}]  }
   0x1   :  { %v17_v0 = vld [vmem:[%s192_s1] sm:$0x3]  ;;  %v31_v8 = vunpack.c.l.s4 %v145_v7  ;;  %v140_v18 = vld [vmem:[%s193_s0 + $0x8] sm:$0xff]  }
   0x2   :  { %v19_v1 = vmul.f32 0.03125, %v17_v0  ;;  %v34_v11 = vshrl.u32 %v33_v9, 7  ;;  %v26_v16 = vld [vmem:[%s194_s2] sm:$0x1]  ;;  %v128_v24 = vunpack.c.l.bf16 %v140_v18  ;;  %v129_v26 = vunpack.c.h.bf16 %v140_v18 }
   0x3   :  { %v32_v10 = vunpack.c.0.s8 %v31_v8  ;;  %v123_v17 = vld [vmem:[%s193_s0] sm:$0xff]  }
   0x4   :  { %v20_v2 = vmul.f32 %v19_v1, %v19_v1  ;;  %v61_v20 = vsub.s32 0, %v34_v11  ;;  %v124_v22 = vunpack.c.l.bf16 %v123_v17  ;;  %v125_v23 = vunpack.c.h.bf16 %v123_v17  ;;  %v47_v25 = vld [vmem:[%s195_s3] sm:$0x1] }
   0x5   :  { %v35_v12 = vsub.s32 %v32_v10, %v34_v11 }
   0x6   :  { %v22_v3 = vrot.slane %v20_v2, 7 }
   0x8   :  { %v24_v4 = vsub.f32 %v19_v1, %v22_v3 }
   0xa   :  { %v25_v5 = vmax.f32 %v24_v4, 0.0 }
   0xc   :  { %v27_v6 = vadd.f32 1e-05, %v25_v5 }
   0xe   :  { %143 = vrsqrt.f32 %v27_v6 }
  0x1b   :  { %v144_v13 = vpop.eup %143 }
  0x1c   :  { %v36_v14 = vrot.slane %v144_v13, %v35_v12 }
  0x1e   :  { %v37_v15 = vcombine.high %v36_v14, %v36_v14 }
  0x20   :  { %v44_v19 = vrot.slane %v37_v15, %v35_v12 }
  0x22   :  { %v46_v21 = vmul.f32 %v44_v19, %v26_v16 }
  0x24   :  { %v48_v27 = vmul.f32 %v46_v21, %v19_v1  ;;  %v62_v28 = vrot.slane %v46_v21, %v61_v20 }
  0x26   :  { %v49_v29 = vsub.f32 %v47_v25, %v48_v27  ;;  %v64_v30 = vmul.f32 %v124_v22, %v62_v28  ;;  %v65_v31 = vmul.f32 %v125_v23, %v62_v28  ;;  %v66_v32 = vmul.f32 %v128_v24, %v62_v28 }
  0x27   :  { %v67_v33 = vmul.f32 %v129_v26, %v62_v28 }
  0x28   :  { %v72_v34 = vrot.slane %v49_v29, %v61_v20 }
  0x2a   :  { %v74_v35 = vadd.f32 %v72_v34, %v64_v30  ;;  %v75_v36 = vadd.f32 %v72_v34, %v65_v31  ;;  %v76_v37 = vadd.f32 %v72_v34, %v66_v32  ;;  %v77_v38 = vadd.f32 %v72_v34, %v67_v33 }
  0x2c   :  { %vm78_vm0 = vcmp.gt.f32.partialorder %v74_v35, 0.0  ;;  %vm79_vm1 = vcmp.gt.f32.partialorder %v75_v36, 0.0  ;;  %v82_v39 = vmul.f32 0.2, %v74_v35  ;;  %v83_v40 = vmul.f32 0.2, %v75_v36 }
  0x2d   :  { %vm80_vm2 = vcmp.gt.f32.partialorder %v76_v37, 0.0  ;;  %vm81_vm3 = vcmp.gt.f32.partialorder %v77_v38, 0.0  ;;  %v84_v41 = vmul.f32 0.2, %v76_v37  ;;  %v85_v42 = vmul.f32 0.2, %v77_v38 }
  0x2e   :  { %v86_v43 = vsel %vm78_vm0, %v74_v35, %v82_v39  ;;  %v87_v44 = vsel %vm79_vm1, %v75_v36, %v83_v40 }
  0x2f   :  { %v133_v45 = vpack.c.bf16 %v87_v44, %v86_v43  ;;  %v88_v46 = vsel %vm80_vm2, %v76_v37, %v84_v41  ;;  %v89_v47 = vsel %vm81_vm3, %v77_v38, %v85_v42 }
  0x30   :  { %v138_v48 = vpack.c.bf16 %v89_v47, %v88_v46 }
  0x31   :  { %134 = vst [vmem:[%s196_s4] sm:$0xff] %v133_v45  }
  0x32   :  { %141 = vst [vmem:[%s196_s4 + $0x8] sm:$0xff] %v138_v48  }

// kernel: dark_face_discriminator.12
= control target key start
LH: loop header
LB: loop body
LE: loop exit
PB: predicated region body
PF: predicated region fallthrough
CT: control target
= control target key end

     0   :  { %v78_v7 = vmov 1966171168   ;;  %v33_v9 = vlaneseq  ;;  %s119_s1 = inlined_call_operand.vmem [shape: f32[1,2,128], index: 1, kind: input, shape index: {}]   ;;  %s120_s0 = inlined_call_operand.vmem [shape: bf16[8,128], index: 0, kind: input, shape index: {}]   ;;  %s121_s2 = inlined_call_operand.vmem [shape: f32[1,128], index: 2, kind: input, shape index: {}]   ;;  %s122_s3 = inlined_call_operand.vmem [shape: f32[1,128], index: 3, kind: input, shape index: {}]   ;;  %s123_s4 = inlined_call_operand.vmem [shape: bf16[8,128], index: 4, kind: output, shape index: {}]  }
   0x1   :  { %v17_v0 = vld [vmem:[%s119_s1] sm:$0x3]  ;;  %v31_v8 = vunpack.c.l.s4 %v78_v7 }
   0x2   :  { %v19_v1 = vmul.f32 0.125, %v17_v0  ;;  %v34_v11 = vshrl.u32 %v33_v9, 7  ;;  %v26_v16 = vld [vmem:[%s121_s2] sm:$0x1] }
   0x3   :  { %v32_v10 = vunpack.c.0.s8 %v31_v8  ;;  %v50_v17 = vld [vmem:[%s120_s0] sm:$0xf] }
   0x4   :  { %v20_v2 = vmul.f32 %v19_v1, %v19_v1  ;;  %v55_v19 = vsub.s32 0, %v34_v11  ;;  %v51_v21 = vunpack.c.l.bf16 %v50_v17  ;;  %v47_v22 = vld [vmem:[%s122_s3] sm:$0x1] }
   0x5   :  { %v35_v12 = vsub.s32 %v32_v10, %v34_v11 }
   0x6   :  { %v22_v3 = vrot.slane %v20_v2, 7 }
   0x8   :  { %v24_v4 = vsub.f32 %v19_v1, %v22_v3 }
   0xa   :  { %v25_v5 = vmax.f32 %v24_v4, 0.0 }
   0xc   :  { %v27_v6 = vadd.f32 1e-05, %v25_v5 }
   0xe   :  { %76 = vrsqrt.f32 %v27_v6 }
  0x1b   :  { %v77_v13 = vpop.eup %76 }
  0x1c   :  { %v36_v14 = vrot.slane %v77_v13, %v35_v12 }
  0x1e   :  { %v37_v15 = vcombine.high %v36_v14, %v36_v14 }
  0x20   :  { %v44_v18 = vrot.slane %v37_v15, %v35_v12 }
  0x22   :  { %v46_v20 = vmul.f32 %v44_v18, %v26_v16 }
  0x24   :  { %v48_v23 = vmul.f32 %v46_v20, %v19_v1  ;;  %v56_v24 = vrot.slane %v46_v20, %v55_v19 }
  0x26   :  { %v49_v25 = vsub.f32 %v47_v22, %v48_v23  ;;  %v58_v26 = vmul.f32 %v56_v24, %v51_v21 }
  0x28   :  { %v63_v27 = vrot.slane %v49_v25, %v55_v19 }
  0x2a   :  { %v65_v28 = vadd.f32 %v63_v27, %v58_v26 }
  0x2c   :  { %vm66_vm0 = vcmp.gt.f32.partialorder %v65_v28, 0.0  ;;  %v67_v29 = vmul.f32 0.2, %v65_v28 }
  0x2e   :  { %v68_v30 = vsel %vm66_vm0, %v65_v28, %v67_v29 }
  0x2f   :  { %v69_v31 = vpack.c.bf16 %v68_v30, %v68_v30 }
  0x31   :  { %70 = vst [vmem:[%s123_s4] sm:$0xf] %v69_v31 }

// kernel: dark_face_discriminator.11
= control target key start
LH: loop header
LB: loop body
LE: loop exit
PB: predicated region body
PF: predicated region fallthrough
CT: control target
= control target key end

     0   :  { %s1208_s1 = inlined_call_operand.vmem [shape: bf16[1024,128], index: 1, kind: input, shape index: {}]   ;;  %s1209_s0 = inlined_call_operand.vmem [shape: bf16[8,1024], index: 0, kind: input, shape index: {}]   ;;  %s1210_s2 = inlined_call_operand.vmem [shape: bf16[8,128], index: 2, kind: output, shape index: {0}]   ;;  %s1211_s3 = inlined_call_operand.vmem [shape: f32[1,2,128], index: 3, kind: output, shape index: {1}]  }
   0x1   :  { %v906_v0 = vld [vmem:[%s1208_s1 + $0x78] sm:$0xff]   ;;  %v910_v4 = vld [vmem:[%s1208_s1 + $0x70] sm:$0xff]   ;;  %v914_v8 = vld [vmem:[%s1208_s1 + $0x68] sm:$0xff]  }
   0x2   :  { %v907_v1 = vld [vmem:[%s1208_s1 + $0xf8] sm:$0xff]   ;;  %818 = vmatprep.subr.bf16.mxu0 %v906_v0  ;;  %v911_v5 = vld [vmem:[%s1208_s1 + $0xf0] sm:$0xff]   ;;  %v915_v9 = vld [vmem:[%s1208_s1 + $0xe8] sm:$0xff]  }
   0x3   :  { %v908_v2 = vld [vmem:[%s1208_s1 + $0x38] sm:$0xff]   ;;  %840 = vmatprep.subr.bf16.mxu1 %v907_v1  ;;  %v912_v6 = vld [vmem:[%s1208_s1 + $0x30] sm:$0xff]   ;;  %v916_v10 = vld [vmem:[%s1208_s1 + $0x28] sm:$0xff]  }
   0x4   :  { %v909_v3 = vld [vmem:[%s1208_s1 + $0xb8] sm:$0xff]   ;;  %819 = vmatpush3.bf16.msra.mxu0 %v908_v2  ;;  %v913_v7 = vld [vmem:[%s1208_s1 + $0xb0] sm:$0xff]   ;;  %v917_v11 = vld [vmem:[%s1208_s1 + $0xa8] sm:$0xff]  }
   0x5   :  { %841 = vmatpush3.bf16.msra.mxu1 %v909_v3  ;;  %820 = vmatprep.subr.bf16.mxu0 %v910_v4  ;;  %v918_v12 = vld [vmem:[%s1208_s1 + $0x60] sm:$0xff]   ;;  %v922_v16 = vld [vmem:[%s1208_s1 + $0x58] sm:$0xff]   ;;  %v926_v20 = vld [vmem:[%s1208_s1 + $0x50] sm:$0xff]  }
   0x6   :  { %842 = vmatprep.subr.bf16.mxu1 %v911_v5  ;;  %v919_v13 = vld [vmem:[%s1208_s1 + $0xe0] sm:$0xff]   ;;  %v923_v17 = vld [vmem:[%s1208_s1 + $0xd8] sm:$0xff]   ;;  %v927_v21 = vld [vmem:[%s1208_s1 + $0xd0] sm:$0xff]  }
   0x7   :  { %v920_v14 = vld [vmem:[%s1208_s1 + $0x20] sm:$0xff]   ;;  %v924_v18 = vld [vmem:[%s1208_s1 + $0x18] sm:$0xff]   ;;  %v928_v22 = vld [vmem:[%s1208_s1 + $0x10] sm:$0xff]  }
   0x8   :  { %821 = vmatpush3.bf16.msra.mxu0 %v912_v6  ;;  %v921_v15 = vld [vmem:[%s1208_s1 + $0xa0] sm:$0xff]   ;;  %v925_v19 = vld [vmem:[%s1208_s1 + $0x98] sm:$0xff]   ;;  %v929_v23 = vld [vmem:[%s1208_s1 + $0x90] sm:$0xff]  }
   0x9   :  { %843 = vmatpush3.bf16.msra.mxu1 %v913_v7  ;;  %822 = vmatprep.subr.bf16.mxu0 %v914_v8  ;;  %v930_v24 = vld [vmem:[%s1208_s1 + $0x48] sm:$0xff]   ;;  %v934_v28 = vld [vmem:[%s1208_s1 + $0x40] sm:$0xff]   ;;  %v942_v38 = vld [vmem:[%s1208_s1 + $0x178] sm:$0xff]  }
   0xa   :  { %844 = vmatprep.subr.bf16.mxu1 %v915_v9  ;;  %v931_v25 = vld [vmem:[%s1208_s1 + $0xc8] sm:$0xff]   ;;  %v935_v29 = vld [vmem:[%s1208_s1 + $0xc0] sm:$0xff]   ;;  %v943_v39 = vld [vmem:[%s1208_s1 + $0x1f8] sm:$0xff]  }
   0xb   :  { %v932_v26 = vld [vmem:[%s1208_s1 + $0x8] sm:$0xff]   ;;  %v936_v30 = vld [vmem:[%s1208_s1] sm:$0xff]   ;;  %v944_v40 = vld [vmem:[%s1208_s1 + $0x138] sm:$0xff]  }
   0xc   :  { %823 = vmatpush3.bf16.msra.mxu0 %v916_v10  ;;  %v933_v27 = vld [vmem:[%s1208_s1 + $0x88] sm:$0xff]   ;;  %v937_v31 = vld [vmem:[%s1208_s1 + $0x80] sm:$0xff]   ;;  %v945_v41 = vld [vmem:[%s1208_s1 + $0x1b8] sm:$0xff]  }
   0xd   :  { %845 = vmatpush3.bf16.msra.mxu1 %v917_v11  ;;  %824 = vmatprep.subr.bf16.mxu0 %v918_v12  ;;  %v14_v32 = vld [vmem:[%s1209_s0] sm:$0xff]  ;;  %v15_v33 = vld [vmem:[%s1209_s0 + $0x8] sm:$0xff]  ;;  %v946_v42 = vld [vmem:[%s1208_s1 + $0x170] sm:$0xff]  }
   0xe   :  { %846 = vmatprep.subr.bf16.mxu1 %v919_v13  ;;  %v746_v34 = vcombine.low %v14_v32, %v14_v32  ;;  %v747_v35 = vcombine.high %v14_v32, %v14_v32  ;;  %v748_v36 = vcombine.low %v15_v33, %v15_v33  ;;  %v749_v37 = vcombine.high %v15_v33, %v15_v33  ;;  %v947_v43 = vld [vmem:[%s1208_s1 + $0x1f0] sm:$0xff]   ;;  %v950_v46 = vld [vmem:[%s1208_s1 + $0x168] sm:$0xff]   ;;  %v954_v50 = vld [vmem:[%s1208_s1 + $0x160] sm:$0xff]  }
   0xf   :  { %v948_v44 = vld [vmem:[%s1208_s1 + $0x130] sm:$0xff]   ;;  %v951_v47 = vld [vmem:[%s1208_s1 + $0x1e8] sm:$0xff]   ;;  %v955_v51 = vld [vmem:[%s1208_s1 + $0x1e0] sm:$0xff]  }
  0x10   :  { %825 = vmatpush3.bf16.msra.mxu0 %v920_v14  ;;  %590 = vmatprep.mubr.bf16.mxu0 %v747_v35  ;;  %v949_v45 = vld [vmem:[%s1208_s1 + $0x1b0] sm:$0xff]   ;;  %v952_v48 = vld [vmem:[%s1208_s1 + $0x128] sm:$0xff]   ;;  %v956_v52 = vld [vmem:[%s1208_s1 + $0x120] sm:$0xff]  }
  0x11   :  { %847 = vmatpush3.bf16.msra.mxu1 %v921_v15  ;;  %826 = vmatprep.subr.bf16.mxu0 %v922_v16  ;;  %v953_v49 = vld [vmem:[%s1208_s1 + $0x1a8] sm:$0xff]   ;;  %v957_v53 = vld [vmem:[%s1208_s1 + $0x1a0] sm:$0xff]   ;;  %v958_v54 = vld [vmem:[%s1208_s1 + $0x158] sm:$0xff]  }
  0x12   :  { %848 = vmatprep.subr.bf16.mxu1 %v923_v17  ;;  %630 = vmatprep.mubr.bf16.mxu1 %v749_v37  ;;  %v959_v55 = vld [vmem:[%s1208_s1 + $0x1d8] sm:$0xff]   ;;  %v962_v58 = vld [vmem:[%s1208_s1 + $0x150] sm:$0xff]   ;;  %v966_v62 = vld [vmem:[%s1208_s1 + $0x148] sm:$0xff]  }
  0x13   :  { %v960_v56 = vld [vmem:[%s1208_s1 + $0x118] sm:$0xff]   ;;  %v963_v59 = vld [vmem:[%s1208_s1 + $0x1d0] sm:$0xff]   ;;  %v967_v63 = vld [vmem:[%s1208_s1 + $0x1c8] sm:$0xff]  }
  0x14   :  { %827 = vmatpush3.bf16.msra.mxu0 %v924_v18  ;;  %v961_v57 = vld [vmem:[%s1208_s1 + $0x198] sm:$0xff]   ;;  %v964_v60 = vld [vmem:[%s1208_s1 + $0x110] sm:$0xff]   ;;  %v968_v0 = vld [vmem:[%s1208_s1 + $0x108] sm:$0xff]  }
  0x15   :  { %849 = vmatpush3.bf16.msra.mxu1 %v925_v19  ;;  %828 = vmatprep.subr.bf16.mxu0 %v926_v20  ;;  %v965_v61 = vld [vmem:[%s1208_s1 + $0x190] sm:$0xff]   ;;  %v969_v1 = vld [vmem:[%s1208_s1 + $0x188] sm:$0xff]   ;;  %v970_v2 = vld [vmem:[%s1208_s1 + $0x140] sm:$0xff]  }
  0x16   :  { %850 = vmatprep.subr.bf16.mxu1 %v927_v21  ;;  %v971_v3 = vld [vmem:[%s1208_s1 + $0x1c0] sm:$0xff]   ;;  %v16_v6 = vld [vmem:[%s1209_s0 + $0x10] sm:$0xff]  ;;  %v17_v9 = vld [vmem:[%s1209_s0 + $0x18] sm:$0xff] }
  0x17   :  { %v972_v4 = vld [vmem:[%s1208_s1 + $0x100] sm:$0xff]   ;;  %v750_v7 = vcombine.low %v16_v6, %v16_v6  ;;  %v751_v8 = vcombine.high %v16_v6, %v16_v6  ;;  %v752_v10 = vcombine.low %v17_v9, %v17_v9  ;;  %v753_v11 = vcombine.high %v17_v9, %v17_v9 }
  0x18   :  { %829 = vmatpush3.bf16.msra.mxu0 %v928_v22  ;;  %v973_v5 = vld [vmem:[%s1208_s1 + $0x180] sm:$0xff]  }
  0x19   :  { %851 = vmatpush3.bf16.msra.mxu1 %v929_v23  ;;  %830 = vmatprep.subr.bf16.mxu0 %v930_v24 }
  0x1a   :  { %852 = vmatprep.subr.bf16.mxu1 %v931_v25 }
  0x1c   :  { %831 = vmatpush3.bf16.msra.mxu0 %v932_v26 }
  0x1d   :  { %853 = vmatpush3.bf16.msra.mxu1 %v933_v27  ;;  %832 = vmatprep.subr.bf16.mxu0 %v934_v28 }
  0x1e   :  { %854 = vmatprep.subr.bf16.mxu1 %v935_v29 }
  0x20   :  { %833 = vmatpush3.bf16.msra.mxu0 %v936_v30 }
  0x21   :  { %855 = vmatpush3.bf16.msra.mxu1 %v937_v31  ;;  %862 = vmatprep.subr.bf16.mxu0 %v942_v38 }
  0x22   :  { %884 = vmatprep.subr.bf16.mxu1 %v943_v39 }
  0x23   :  { %591 = vmatmul.mubr.bf16.vlgmr.msra.gmra.mxu0 %v746_v34 }
  0x24   :  { %631 = vmatmul.mubr.bf16.vlgmr.msra.gmra.mxu1 %v748_v36  ;;  %863 = vmatpush3.bf16.msra.mxu0 %v944_v40  ;;  %v733_v40 = vlaneseq }
  0x25   :  { %885 = vmatpush3.bf16.msra.mxu1 %v945_v41  ;;  %864 = vmatprep.subr.bf16.mxu0 %v946_v42 }
  0x26   :  { %886 = vmatprep.subr.bf16.mxu1 %v947_v43  ;;  %670 = vmatprep.mubr.bf16.mxu0 %v751_v8 }
  0x27   :  { %710 = vmatprep.mubr.bf16.mxu1 %v753_v11 }
  0x28   :  { %865 = vmatpush3.bf16.msra.mxu0 %v948_v44 }
  0x29   :  { %887 = vmatpush3.bf16.msra.mxu1 %v949_v45  ;;  %866 = vmatprep.subr.bf16.mxu0 %v950_v46  ;;  %v734_v45 = vshrl.u32 %v733_v40, 7 }
  0x2a   :  { %888 = vmatprep.subr.bf16.mxu1 %v951_v47 }
  0x2b   :  { %vm735_vm0 = vcmp.eq.s32.totalorder %v734_v45, 0 }
  0x2c   :  { %867 = vmatpush3.bf16.msra.mxu0 %v952_v48 }
  0x2d   :  { %889 = vmatpush3.bf16.msra.mxu1 %v953_v49  ;;  %868 = vmatprep.subr.bf16.mxu0 %v954_v50 }
  0x2e   :  { %890 = vmatprep.subr.bf16.mxu1 %v955_v51 }
  0x30   :  { %869 = vmatpush3.bf16.msra.mxu0 %v956_v52 }
  0x31   :  { %891 = vmatpush3.bf16.msra.mxu1 %v957_v53  ;;  %870 = vmatprep.subr.bf16.mxu0 %v958_v54 }
  0x32   :  { %892 = vmatprep.subr.bf16.mxu1 %v959_v55 }
  0x34   :  { %871 = vmatpush3.bf16.msra.mxu0 %v960_v56 }
  0x35   :  { %893 = vmatpush3.bf16.msra.mxu1 %v961_v57  ;;  %872 = vmatprep.subr.bf16.mxu0 %v962_v58 }
  0x36   :  { %894 = vmatprep.subr.bf16.mxu1 %v963_v59 }
  0x38   :  { %873 = vmatpush3.bf16.msra.mxu0 %v964_v60 }
  0x39   :  { %895 = vmatpush3.bf16.msra.mxu1 %v965_v61  ;;  %874 = vmatprep.subr.bf16.mxu0 %v966_v62 }
  0x3a   :  { %896 = vmatprep.subr.bf16.mxu1 %v967_v63 }
  0x3c   :  { %875 = vmatpush3.bf16.msra.mxu0 %v968_v0 }
  0x3d   :  { %897 = vmatpush3.bf16.msra.mxu1 %v969_v1  ;;  %876 = vmatprep.subr.bf16.mxu0 %v970_v2 }
  0x3e   :  { %898 = vmatprep.subr.bf16.mxu1 %v971_v3 }
  0x40   :  { %877 = vmatpush3.bf16.msra.mxu0 %v972_v4 }
  0x41   :  { %899 = vmatpush3.bf16.msra.mxu1 %v973_v5 }
  0x43   :  { %671 = vmatmul.mubr.bf16.vlgmr.msra.gmra.mxu0 %v750_v7 }
  0x44   :  { %711 = vmatmul.mubr.bf16.vlgmr.msra.gmra.mxu1 %v752_v10 }
  0xe3   :  { %v834_v12 = vpop.f32.mrf.mxu0 }
  0xe4   :  { %v856_v13 = vpop.f32.mrf.mxu1 }
  0xe5   :  { %v835_v14 = vpop.f32.mrf.mxu0 }
  0xe6   :  { %v857_v15 = vpop.f32.mrf.mxu1  ;;  %v836_v20 = vadd.f32 %v835_v14, %v834_v12 }
  0xe7   :  { %v837_v16 = vpop.f32.mrf.mxu0  ;;  %v858_v21 = vadd.f32 %v857_v15, %v856_v13 }
  0xe8   :  { %v859_v17 = vpop.f32.mrf.mxu1 }
  0xe9   :  { %v838_v18 = vpop.f32.mrf.mxu0  ;;  %v633_v26 = vadd.f32 %v858_v21, %v836_v20 }
  0xea   :  { %v860_v19 = vpop.f32.mrf.mxu1 }
 0x103   :  { %v878_v22 = vpop.f32.mrf.mxu0 }
 0x104   :  { %v900_v23 = vpop.f32.mrf.mxu1 }
 0x105   :  { %v879_v24 = vpop.f32.mrf.mxu0 }
 0x106   :  { %v901_v25 = vpop.f32.mrf.mxu1  ;;  %v880_v27 = vadd.f32 %v879_v24, %v878_v22 }
 0x107   :  { %v881_v28 = vpop.f32.mrf.mxu0  ;;  %v902_v31 = vadd.f32 %v901_v25, %v900_v23 }
 0x108   :  { %v903_v29 = vpop.f32.mrf.mxu1  ;;  %v673_v30 = vadd.f32 %v880_v27, %v633_v26 }
 0x109   :  { %v882_v32 = vpop.f32.mrf.mxu0 }
 0x10a   :  { %v904_v33 = vpop.f32.mrf.mxu1  ;;  %v713_v34 = vadd.f32 %v902_v31, %v673_v30 }
 0x10c   :  { %v718_v35 = vpack.c.bf16 %v713_v34, %v713_v34  ;;  %v720_v36 = vrot.slane %v713_v34, 4  ;;  %v726_v37 = vmul.f32 %v713_v34, %v713_v34 }
 0x10e   :  { %719 = vst [vmem:[%s1210_s2] sm:$0xf] %v718_v35  ;;  %v721_v38 = vadd.f32 %v720_v36, %v713_v34  ;;  %v727_v39 = vrot.slane %v726_v37, 4 }
 0x110   :  { %v722_v41 = vrot.slane %v721_v38, 2  ;;  %v728_v42 = vadd.f32 %v727_v39, %v726_v37 }
 0x112   :  { %v723_v43 = vadd.f32 %v722_v41, %v721_v38  ;;  %v729_v44 = vrot.slane %v728_v42, 2 }
 0x114   :  { %v724_v46 = vrot.slane %v723_v43, 1  ;;  %v730_v47 = vadd.f32 %v729_v44, %v728_v42 }
 0x116   :  { %v731_v48 = vrot.slane %v730_v47, 1  ;;  %v725_v49 = vadd.f32 %v724_v46, %v723_v43 }
 0x118   :  { %v732_v50 = vadd.f32 %v731_v48, %v730_v47 }
 0x11a   :  { %v736_v51 = vsel %vm735_vm0, %v725_v49, %v732_v50 }
 0x11b   :  { %737 = vst [vmem:[%s1211_s3] sm:$0x3] %v736_v51 }

// kernel: dark_face_discriminator.13
= control target key start
LH: loop header
LB: loop body
LE: loop exit
PB: predicated region body
PF: predicated region fallthrough
CT: control target
= control target key end

     0   :  { %s2345_s1 = inlined_call_operand.vmem [shape: bf16[2048,128], index: 1, kind: input, shape index: {}]   ;;  %s2346_s0 = inlined_call_operand.vmem [shape: bf16[8,2048], index: 0, kind: input, shape index: {}]   ;;  %s2347_s2 = inlined_call_operand.vmem [shape: f32[1,128], index: 2, kind: input, shape index: {}]   ;;  %s2348_s3 = inlined_call_operand.vmem [shape: f32[8,128], index: 3, kind: output, shape index: {}]  }
   0x1   :  { %v1763_v0 = vld [vmem:[%s2345_s1 + $0x78] sm:$0xff]   ;;  %v1767_v4 = vld [vmem:[%s2345_s1 + $0x70] sm:$0xff]   ;;  %v1771_v8 = vld [vmem:[%s2345_s1 + $0x68] sm:$0xff]  }
   0x2   :  { %v1764_v1 = vld [vmem:[%s2345_s1 + $0xf8] sm:$0xff]   ;;  %1587 = vmatprep.subr.bf16.mxu0 %v1763_v0  ;;  %v1768_v5 = vld [vmem:[%s2345_s1 + $0xf0] sm:$0xff]   ;;  %v1772_v9 = vld [vmem:[%s2345_s1 + $0xe8] sm:$0xff]  }
   0x3   :  { %v1765_v2 = vld [vmem:[%s2345_s1 + $0x38] sm:$0xff]   ;;  %1609 = vmatprep.subr.bf16.mxu1 %v1764_v1  ;;  %v1769_v6 = vld [vmem:[%s2345_s1 + $0x30] sm:$0xff]   ;;  %v1773_v10 = vld [vmem:[%s2345_s1 + $0x28] sm:$0xff]  }
   0x4   :  { %v1766_v3 = vld [vmem:[%s2345_s1 + $0xb8] sm:$0xff]   ;;  %1588 = vmatpush3.bf16.msra.mxu0 %v1765_v2  ;;  %v1770_v7 = vld [vmem:[%s2345_s1 + $0xb0] sm:$0xff]   ;;  %v1774_v11 = vld [vmem:[%s2345_s1 + $0xa8] sm:$0xff]  }
   0x5   :  { %1610 = vmatpush3.bf16.msra.mxu1 %v1766_v3  ;;  %1589 = vmatprep.subr.bf16.mxu0 %v1767_v4  ;;  %v1775_v12 = vld [vmem:[%s2345_s1 + $0x60] sm:$0xff]   ;;  %v1779_v16 = vld [vmem:[%s2345_s1 + $0x58] sm:$0xff]   ;;  %v1783_v20 = vld [vmem:[%s2345_s1 + $0x50] sm:$0xff]  }
   0x6   :  { %1611 = vmatprep.subr.bf16.mxu1 %v1768_v5  ;;  %v1776_v13 = vld [vmem:[%s2345_s1 + $0xe0] sm:$0xff]   ;;  %v1780_v17 = vld [vmem:[%s2345_s1 + $0xd8] sm:$0xff]   ;;  %v1784_v21 = vld [vmem:[%s2345_s1 + $0xd0] sm:$0xff]  }
   0x7   :  { %v1777_v14 = vld [vmem:[%s2345_s1 + $0x20] sm:$0xff]   ;;  %v1781_v18 = vld [vmem:[%s2345_s1 + $0x18] sm:$0xff]   ;;  %v1785_v22 = vld [vmem:[%s2345_s1 + $0x10] sm:$0xff]  }
   0x8   :  { %1590 = vmatpush3.bf16.msra.mxu0 %v1769_v6  ;;  %v1778_v15 = vld [vmem:[%s2345_s1 + $0xa0] sm:$0xff]   ;;  %v1782_v19 = vld [vmem:[%s2345_s1 + $0x98] sm:$0xff]   ;;  %v1786_v23 = vld [vmem:[%s2345_s1 + $0x90] sm:$0xff]  }
   0x9   :  { %1612 = vmatpush3.bf16.msra.mxu1 %v1770_v7  ;;  %1591 = vmatprep.subr.bf16.mxu0 %v1771_v8  ;;  %v1787_v24 = vld [vmem:[%s2345_s1 + $0x48] sm:$0xff]   ;;  %v1791_v28 = vld [vmem:[%s2345_s1 + $0x40] sm:$0xff]   ;;  %v1799_v38 = vld [vmem:[%s2345_s1 + $0x178] sm:$0xff]  }
   0xa   :  { %1613 = vmatprep.subr.bf16.mxu1 %v1772_v9  ;;  %v1788_v25 = vld [vmem:[%s2345_s1 + $0xc8] sm:$0xff]   ;;  %v1792_v29 = vld [vmem:[%s2345_s1 + $0xc0] sm:$0xff]   ;;  %v1800_v39 = vld [vmem:[%s2345_s1 + $0x1f8] sm:$0xff]  }
   0xb   :  { %v1789_v26 = vld [vmem:[%s2345_s1 + $0x8] sm:$0xff]   ;;  %v1793_v30 = vld [vmem:[%s2345_s1] sm:$0xff]   ;;  %v1801_v40 = vld [vmem:[%s2345_s1 + $0x138] sm:$0xff]  }
   0xc   :  { %1592 = vmatpush3.bf16.msra.mxu0 %v1773_v10  ;;  %v1790_v27 = vld [vmem:[%s2345_s1 + $0x88] sm:$0xff]   ;;  %v1794_v31 = vld [vmem:[%s2345_s1 + $0x80] sm:$0xff]   ;;  %v1802_v41 = vld [vmem:[%s2345_s1 + $0x1b8] sm:$0xff]  }
   0xd   :  { %1614 = vmatpush3.bf16.msra.mxu1 %v1774_v11  ;;  %1593 = vmatprep.subr.bf16.mxu0 %v1775_v12  ;;  %v15_v32 = vld [vmem:[%s2346_s0] sm:$0xff]  ;;  %v16_v33 = vld [vmem:[%s2346_s0 + $0x8] sm:$0xff]  ;;  %v1803_v42 = vld [vmem:[%s2345_s1 + $0x170] sm:$0xff]  }
   0xe   :  { %1615 = vmatprep.subr.bf16.mxu1 %v1776_v13  ;;  %v1442_v34 = vcombine.low %v15_v32, %v15_v32  ;;  %v1443_v35 = vcombine.high %v15_v32, %v15_v32  ;;  %v1444_v36 = vcombine.low %v16_v33, %v16_v33  ;;  %v1445_v37 = vcombine.high %v16_v33, %v16_v33  ;;  %v1804_v43 = vld [vmem:[%s2345_s1 + $0x1f0] sm:$0xff]   ;;  %v1807_v46 = vld [vmem:[%s2345_s1 + $0x168] sm:$0xff]   ;;  %v1811_v50 = vld [vmem:[%s2345_s1 + $0x160] sm:$0xff]  }
   0xf   :  { %v1805_v44 = vld [vmem:[%s2345_s1 + $0x130] sm:$0xff]   ;;  %v1808_v47 = vld [vmem:[%s2345_s1 + $0x1e8] sm:$0xff]   ;;  %v1812_v51 = vld [vmem:[%s2345_s1 + $0x1e0] sm:$0xff]  }
  0x10   :  { %1594 = vmatpush3.bf16.msra.mxu0 %v1777_v14  ;;  %1142 = vmatprep.mubr.bf16.mxu0 %v1443_v35  ;;  %v1806_v45 = vld [vmem:[%s2345_s1 + $0x1b0] sm:$0xff]   ;;  %v1809_v48 = vld [vmem:[%s2345_s1 + $0x128] sm:$0xff]   ;;  %v1813_v52 = vld [vmem:[%s2345_s1 + $0x120] sm:$0xff]  }
  0x11   :  { %1616 = vmatpush3.bf16.msra.mxu1 %v1778_v15  ;;  %1595 = vmatprep.subr.bf16.mxu0 %v1779_v16  ;;  %v1810_v49 = vld [vmem:[%s2345_s1 + $0x1a8] sm:$0xff]   ;;  %v1814_v53 = vld [vmem:[%s2345_s1 + $0x1a0] sm:$0xff]   ;;  %v1815_v54 = vld [vmem:[%s2345_s1 + $0x158] sm:$0xff]  }
  0x12   :  { %1617 = vmatprep.subr.bf16.mxu1 %v1780_v17  ;;  %1182 = vmatprep.mubr.bf16.mxu1 %v1445_v37  ;;  %v1816_v55 = vld [vmem:[%s2345_s1 + $0x1d8] sm:$0xff]   ;;  %v1819_v58 = vld [vmem:[%s2345_s1 + $0x150] sm:$0xff]   ;;  %v1823_v62 = vld [vmem:[%s2345_s1 + $0x148] sm:$0xff]  }
  0x13   :  { %v1817_v56 = vld [vmem:[%s2345_s1 + $0x118] sm:$0xff]   ;;  %v1820_v59 = vld [vmem:[%s2345_s1 + $0x1d0] sm:$0xff]   ;;  %v1824_v63 = vld [vmem:[%s2345_s1 + $0x1c8] sm:$0xff]  }
  0x14   :  { %1596 = vmatpush3.bf16.msra.mxu0 %v1781_v18  ;;  %v1818_v57 = vld [vmem:[%s2345_s1 + $0x198] sm:$0xff]   ;;  %v1821_v60 = vld [vmem:[%s2345_s1 + $0x110] sm:$0xff]   ;;  %v1825_v0 = vld [vmem:[%s2345_s1 + $0x108] sm:$0xff]  }
  0x15   :  { %1618 = vmatpush3.bf16.msra.mxu1 %v1782_v19  ;;  %1597 = vmatprep.subr.bf16.mxu0 %v1783_v20  ;;  %v1822_v61 = vld [vmem:[%s2345_s1 + $0x190] sm:$0xff]   ;;  %v1826_v1 = vld [vmem:[%s2345_s1 + $0x188] sm:$0xff]   ;;  %v1827_v2 = vld [vmem:[%s2345_s1 + $0x140] sm:$0xff]  }
  0x16   :  { %1619 = vmatprep.subr.bf16.mxu1 %v1784_v21  ;;  %v1828_v3 = vld [vmem:[%s2345_s1 + $0x1c0] sm:$0xff]   ;;  %v17_v6 = vld [vmem:[%s2346_s0 + $0x10] sm:$0xff]  ;;  %v18_v9 = vld [vmem:[%s2346_s0 + $0x18] sm:$0xff] }
  0x17   :  { %v1829_v4 = vld [vmem:[%s2345_s1 + $0x100] sm:$0xff]   ;;  %v1446_v7 = vcombine.low %v17_v6, %v17_v6  ;;  %v1447_v8 = vcombine.high %v17_v6, %v17_v6  ;;  %v1448_v10 = vcombine.low %v18_v9, %v18_v9  ;;  %v1449_v11 = vcombine.high %v18_v9, %v18_v9  ;;  %v1835_v12 = vld [vmem:[%s2345_s1 + $0x278] sm:$0xff]   ;;  %v1839_v16 = vld [vmem:[%s2345_s1 + $0x270] sm:$0xff]  }
  0x18   :  { %1598 = vmatpush3.bf16.msra.mxu0 %v1785_v22  ;;  %v1830_v5 = vld [vmem:[%s2345_s1 + $0x180] sm:$0xff]   ;;  %v1836_v13 = vld [vmem:[%s2345_s1 + $0x2f8] sm:$0xff]   ;;  %v1840_v17 = vld [vmem:[%s2345_s1 + $0x2f0] sm:$0xff]  }
  0x19   :  { %1620 = vmatpush3.bf16.msra.mxu1 %v1786_v23  ;;  %1599 = vmatprep.subr.bf16.mxu0 %v1787_v24  ;;  %v1837_v14 = vld [vmem:[%s2345_s1 + $0x238] sm:$0xff]   ;;  %v1841_v18 = vld [vmem:[%s2345_s1 + $0x230] sm:$0xff]   ;;  %v1843_v20 = vld [vmem:[%s2345_s1 + $0x268] sm:$0xff]  }
  0x1a   :  { %1621 = vmatprep.subr.bf16.mxu1 %v1788_v25  ;;  %v1838_v15 = vld [vmem:[%s2345_s1 + $0x2b8] sm:$0xff]   ;;  %v1842_v19 = vld [vmem:[%s2345_s1 + $0x2b0] sm:$0xff]   ;;  %v1844_v21 = vld [vmem:[%s2345_s1 + $0x2e8] sm:$0xff]  }
  0x1b   :  { %v1845_v22 = vld [vmem:[%s2345_s1 + $0x228] sm:$0xff]   ;;  %v1847_v24 = vld [vmem:[%s2345_s1 + $0x260] sm:$0xff]   ;;  %v1855_v32 = vld [vmem:[%s2345_s1 + $0x250] sm:$0xff]  }
  0x1c   :  { %1600 = vmatpush3.bf16.msra.mxu0 %v1789_v26  ;;  %v1846_v23 = vld [vmem:[%s2345_s1 + $0x2a8] sm:$0xff]   ;;  %v1848_v25 = vld [vmem:[%s2345_s1 + $0x2e0] sm:$0xff]   ;;  %v1856_v33 = vld [vmem:[%s2345_s1 + $0x2d0] sm:$0xff]  }
  0x1d   :  { %1622 = vmatpush3.bf16.msra.mxu1 %v1790_v27  ;;  %1601 = vmatprep.subr.bf16.mxu0 %v1791_v28  ;;  %v1849_v26 = vld [vmem:[%s2345_s1 + $0x220] sm:$0xff]   ;;  %v1851_v28 = vld [vmem:[%s2345_s1 + $0x258] sm:$0xff]   ;;  %v1858_v35 = vld [vmem:[%s2345_s1 + $0x290] sm:$0xff]  }
  0x1e   :  { %1623 = vmatprep.subr.bf16.mxu1 %v1792_v29  ;;  %v1850_v27 = vld [vmem:[%s2345_s1 + $0x2a0] sm:$0xff]   ;;  %v1852_v29 = vld [vmem:[%s2345_s1 + $0x2d8] sm:$0xff]   ;;  %v1860_v37 = vld [vmem:[%s2345_s1 + $0x2c8] sm:$0xff]  }
  0x1f   :  { %v1891_v6 = vld [vmem:[%s2345_s1 + $0x350] sm:$0xff]  }
  0x20   :  { %1602 = vmatpush3.bf16.msra.mxu0 %v1793_v30  ;;  %v1853_v30 = vld [vmem:[%s2345_s1 + $0x218] sm:$0xff]   ;;  %v1894_v9 = vld [vmem:[%s2345_s1 + $0x390] sm:$0xff]  }
  0x21   :  { %1624 = vmatpush3.bf16.msra.mxu1 %v1794_v31  ;;  %1631 = vmatprep.subr.bf16.mxu0 %v1799_v38  ;;  %v1854_v31 = vld [vmem:[%s2345_s1 + $0x298] sm:$0xff]   ;;  %v1861_v38 = vld [vmem:[%s2345_s1 + $0x208] sm:$0xff]  }
  0x22   :  { %1653 = vmatprep.subr.bf16.mxu1 %v1800_v39  ;;  %v1862_v39 = vld [vmem:[%s2345_s1 + $0x288] sm:$0xff]  }
  0x23   :  { %1143 = vmatmul.mubr.bf16.vlgmr.msra.gmra.mxu0 %v1442_v34  ;;  %v1857_v34 = vld [vmem:[%s2345_s1 + $0x210] sm:$0xff]  }
  0x24   :  { %1183 = vmatmul.mubr.bf16.vlgmr.msra.gmra.mxu1 %v1444_v36  ;;  %1632 = vmatpush3.bf16.msra.mxu0 %v1801_v40  ;;  %v1859_v36 = vld [vmem:[%s2345_s1 + $0x248] sm:$0xff]   ;;  %v1863_v40 = vld [vmem:[%s2345_s1 + $0x240] sm:$0xff]  }
  0x25   :  { %1654 = vmatpush3.bf16.msra.mxu1 %v1802_v41  ;;  %1633 = vmatprep.subr.bf16.mxu0 %v1803_v42  ;;  %v1864_v41 = vld [vmem:[%s2345_s1 + $0x2c0] sm:$0xff]  }
  0x26   :  { %1655 = vmatprep.subr.bf16.mxu1 %v1804_v43  ;;  %1222 = vmatprep.mubr.bf16.mxu0 %v1447_v8  ;;  %v1865_v42 = vld [vmem:[%s2345_s1 + $0x200] sm:$0xff]   ;;  %v1893_v8 = vld [vmem:[%s2345_s1 + $0x310] sm:$0xff]  }
  0x27   :  { %1262 = vmatprep.mubr.bf16.mxu1 %v1449_v11  ;;  %v1866_v43 = vld [vmem:[%s2345_s1 + $0x280] sm:$0xff]   ;;  %v1896_v11 = vld [vmem:[%s2345_s1 + $0x3c8] sm:$0xff]  }
  0x28   :  { %1634 = vmatpush3.bf16.msra.mxu0 %v1805_v44  ;;  %v19_v44 = vld [vmem:[%s2346_s0 + $0x20] sm:$0xff] }
  0x29   :  { %1656 = vmatpush3.bf16.msra.mxu1 %v1806_v45  ;;  %1635 = vmatprep.subr.bf16.mxu0 %v1807_v46  ;;  %v20_v45 = vld [vmem:[%s2346_s0 + $0x28] sm:$0xff]  ;;  %v1450_v46 = vcombine.low %v19_v44, %v19_v44 }
  0x2a   :  { %1657 = vmatprep.subr.bf16.mxu1 %v1808_v47  ;;  %v1451_v47 = vcombine.high %v19_v44, %v19_v44 }
  0x2c   :  { %1636 = vmatpush3.bf16.msra.mxu0 %v1809_v48  ;;  %v1452_v48 = vcombine.low %v20_v45, %v20_v45 }
  0x2d   :  { %1658 = vmatpush3.bf16.msra.mxu1 %v1810_v49  ;;  %1637 = vmatprep.subr.bf16.mxu0 %v1811_v50  ;;  %v1453_v49 = vcombine.high %v20_v45, %v20_v45  ;;  %v1871_v50 = vld [vmem:[%s2345_s1 + $0x378] sm:$0xff]  }
  0x2e   :  { %1659 = vmatprep.subr.bf16.mxu1 %v1812_v51  ;;  %v1872_v51 = vld [vmem:[%s2345_s1 + $0x3f8] sm:$0xff]  }
  0x30   :  { %1638 = vmatpush3.bf16.msra.mxu0 %v1813_v52  ;;  %v1873_v52 = vld [vmem:[%s2345_s1 + $0x338] sm:$0xff]  }
  0x31   :  { %1660 = vmatpush3.bf16.msra.mxu1 %v1814_v53  ;;  %1639 = vmatprep.subr.bf16.mxu0 %v1815_v54  ;;  %v1874_v53 = vld [vmem:[%s2345_s1 + $0x3b8] sm:$0xff]   ;;  %v1875_v54 = vld [vmem:[%s2345_s1 + $0x370] sm:$0xff]  }
  0x32   :  { %1661 = vmatprep.subr.bf16.mxu1 %v1816_v55  ;;  %v1876_v55 = vld [vmem:[%s2345_s1 + $0x3f0] sm:$0xff]  }
  0x34   :  { %1640 = vmatpush3.bf16.msra.mxu0 %v1817_v56  ;;  %v1877_v56 = vld [vmem:[%s2345_s1 + $0x330] sm:$0xff]  }
  0x35   :  { %1662 = vmatpush3.bf16.msra.mxu1 %v1818_v57  ;;  %1641 = vmatprep.subr.bf16.mxu0 %v1819_v58  ;;  %v1878_v57 = vld [vmem:[%s2345_s1 + $0x3b0] sm:$0xff]   ;;  %v1879_v58 = vld [vmem:[%s2345_s1 + $0x368] sm:$0xff]  }
  0x36   :  { %1663 = vmatprep.subr.bf16.mxu1 %v1820_v59  ;;  %v1880_v59 = vld [vmem:[%s2345_s1 + $0x3e8] sm:$0xff]  }
  0x38   :  { %1642 = vmatpush3.bf16.msra.mxu0 %v1821_v60  ;;  %v1881_v60 = vld [vmem:[%s2345_s1 + $0x328] sm:$0xff]  }
  0x39   :  { %1664 = vmatpush3.bf16.msra.mxu1 %v1822_v61  ;;  %1643 = vmatprep.subr.bf16.mxu0 %v1823_v62  ;;  %v1882_v61 = vld [vmem:[%s2345_s1 + $0x3a8] sm:$0xff]   ;;  %v1883_v62 = vld [vmem:[%s2345_s1 + $0x360] sm:$0xff]  }
  0x3a   :  { %1665 = vmatprep.subr.bf16.mxu1 %v1824_v63  ;;  %v1884_v63 = vld [vmem:[%s2345_s1 + $0x3e0] sm:$0xff]  }
  0x3c   :  { %1644 = vmatpush3.bf16.msra.mxu0 %v1825_v0  ;;  %v1885_v0 = vld [vmem:[%s2345_s1 + $0x320] sm:$0xff]  }
  0x3d   :  { %1666 = vmatpush3.bf16.msra.mxu1 %v1826_v1  ;;  %1645 = vmatprep.subr.bf16.mxu0 %v1827_v2  ;;  %v1886_v1 = vld [vmem:[%s2345_s1 + $0x3a0] sm:$0xff]   ;;  %v1887_v2 = vld [vmem:[%s2345_s1 + $0x358] sm:$0xff]  }
  0x3e   :  { %1667 = vmatprep.subr.bf16.mxu1 %v1828_v3  ;;  %v1888_v3 = vld [vmem:[%s2345_s1 + $0x3d8] sm:$0xff]  }
  0x40   :  { %1646 = vmatpush3.bf16.msra.mxu0 %v1829_v4  ;;  %v1889_v4 = vld [vmem:[%s2345_s1 + $0x318] sm:$0xff]  }
  0x41   :  { %1668 = vmatpush3.bf16.msra.mxu1 %v1830_v5  ;;  %1675 = vmatprep.subr.bf16.mxu0 %v1835_v12  ;;  %v1890_v5 = vld [vmem:[%s2345_s1 + $0x398] sm:$0xff]   ;;  %v1897_v12 = vld [vmem:[%s2345_s1 + $0x308] sm:$0xff]  }
  0x42   :  { %1697 = vmatprep.subr.bf16.mxu1 %v1836_v13  ;;  %v1898_v13 = vld [vmem:[%s2345_s1 + $0x388] sm:$0xff]  }
  0x43   :  { %1223 = vmatmul.mubr.bf16.vlgmr.msra.gmra.mxu0 %v1446_v7  ;;  %v1892_v7 = vld [vmem:[%s2345_s1 + $0x3d0] sm:$0xff]  }
  0x44   :  { %1263 = vmatmul.mubr.bf16.vlgmr.msra.gmra.mxu1 %v1448_v10  ;;  %1676 = vmatpush3.bf16.msra.mxu0 %v1837_v14  ;;  %v1895_v10 = vld [vmem:[%s2345_s1 + $0x348] sm:$0xff]   ;;  %v1899_v14 = vld [vmem:[%s2345_s1 + $0x340] sm:$0xff]  }
  0x45   :  { %1698 = vmatpush3.bf16.msra.mxu1 %v1838_v15  ;;  %1677 = vmatprep.subr.bf16.mxu0 %v1839_v16  ;;  %v1900_v15 = vld [vmem:[%s2345_s1 + $0x3c0] sm:$0xff]  }
  0x46   :  { %1699 = vmatprep.subr.bf16.mxu1 %v1840_v17  ;;  %1302 = vmatprep.mubr.bf16.mxu0 %v1451_v47  ;;  %v1901_v16 = vld [vmem:[%s2345_s1 + $0x300] sm:$0xff]  }
  0x47   :  { %1342 = vmatprep.mubr.bf16.mxu1 %v1453_v49  ;;  %v1902_v17 = vld [vmem:[%s2345_s1 + $0x380] sm:$0xff]  }
  0x48   :  { %1678 = vmatpush3.bf16.msra.mxu0 %v1841_v18  ;;  %v21_v18 = vld [vmem:[%s2346_s0 + $0x30] sm:$0xff] }
  0x49   :  { %1700 = vmatpush3.bf16.msra.mxu1 %v1842_v19  ;;  %1679 = vmatprep.subr.bf16.mxu0 %v1843_v20  ;;  %v22_v19 = vld [vmem:[%s2346_s0 + $0x38] sm:$0xff]  ;;  %v1454_v20 = vcombine.low %v21_v18, %v21_v18 }
  0x4a   :  { %1701 = vmatprep.subr.bf16.mxu1 %v1844_v21  ;;  %v1455_v21 = vcombine.high %v21_v18, %v21_v18 }
  0x4c   :  { %1680 = vmatpush3.bf16.msra.mxu0 %v1845_v22  ;;  %v1456_v22 = vcombine.low %v22_v19, %v22_v19 }
  0x4d   :  { %1702 = vmatpush3.bf16.msra.mxu1 %v1846_v23  ;;  %1681 = vmatprep.subr.bf16.mxu0 %v1847_v24  ;;  %v1457_v23 = vcombine.high %v22_v19, %v22_v19 }
  0x4e   :  { %1703 = vmatprep.subr.bf16.mxu1 %v1848_v25 }
  0x50   :  { %1682 = vmatpush3.bf16.msra.mxu0 %v1849_v26  ;;  %v1441_v26 = vld [vmem:[%s2347_s2] ss:$0 sm:$0xff] }
  0x51   :  { %1704 = vmatpush3.bf16.msra.mxu1 %v1850_v27  ;;  %1683 = vmatprep.subr.bf16.mxu0 %v1851_v28 }
  0x52   :  { %1705 = vmatprep.subr.bf16.mxu1 %v1852_v29 }
  0x54   :  { %1684 = vmatpush3.bf16.msra.mxu0 %v1853_v30 }
  0x55   :  { %1706 = vmatpush3.bf16.msra.mxu1 %v1854_v31  ;;  %1685 = vmatprep.subr.bf16.mxu0 %v1855_v32 }
  0x56   :  { %1707 = vmatprep.subr.bf16.mxu1 %v1856_v33 }
  0x58   :  { %1686 = vmatpush3.bf16.msra.mxu0 %v1857_v34 }
  0x59   :  { %1708 = vmatpush3.bf16.msra.mxu1 %v1858_v35  ;;  %1687 = vmatprep.subr.bf16.mxu0 %v1859_v36 }
  0x5a   :  { %1709 = vmatprep.subr.bf16.mxu1 %v1860_v37 }
  0x5c   :  { %1688 = vmatpush3.bf16.msra.mxu0 %v1861_v38 }
  0x5d   :  { %1710 = vmatpush3.bf16.msra.mxu1 %v1862_v39  ;;  %1689 = vmatprep.subr.bf16.mxu0 %v1863_v40 }
  0x5e   :  { %1711 = vmatprep.subr.bf16.mxu1 %v1864_v41 }
  0x60   :  { %1690 = vmatpush3.bf16.msra.mxu0 %v1865_v42 }
  0x61   :  { %1712 = vmatpush3.bf16.msra.mxu1 %v1866_v43  ;;  %1719 = vmatprep.subr.bf16.mxu0 %v1871_v50 }
  0x62   :  { %1741 = vmatprep.subr.bf16.mxu1 %v1872_v51 }
  0x63   :  { %1303 = vmatmul.mubr.bf16.vlgmr.msra.gmra.mxu0 %v1450_v46 }
  0x64   :  { %1343 = vmatmul.mubr.bf16.vlgmr.msra.gmra.mxu1 %v1452_v48  ;;  %1720 = vmatpush3.bf16.msra.mxu0 %v1873_v52 }
  0x65   :  { %1742 = vmatpush3.bf16.msra.mxu1 %v1874_v53  ;;  %1721 = vmatprep.subr.bf16.mxu0 %v1875_v54 }
  0x66   :  { %1743 = vmatprep.subr.bf16.mxu1 %v1876_v55  ;;  %1382 = vmatprep.mubr.bf16.mxu0 %v1455_v21 }
  0x67   :  { %1422 = vmatprep.mubr.bf16.mxu1 %v1457_v23 }
  0x68   :  { %1722 = vmatpush3.bf16.msra.mxu0 %v1877_v56 }
  0x69   :  { %1744 = vmatpush3.bf16.msra.mxu1 %v1878_v57  ;;  %1723 = vmatprep.subr.bf16.mxu0 %v1879_v58 }
  0x6a   :  { %1745 = vmatprep.subr.bf16.mxu1 %v1880_v59 }
  0x6c   :  { %1724 = vmatpush3.bf16.msra.mxu0 %v1881_v60 }
  0x6d   :  { %1746 = vmatpush3.bf16.msra.mxu1 %v1882_v61  ;;  %1725 = vmatprep.subr.bf16.mxu0 %v1883_v62 }
  0x6e   :  { %1747 = vmatprep.subr.bf16.mxu1 %v1884_v63 }
  0x70   :  { %1726 = vmatpush3.bf16.msra.mxu0 %v1885_v0 }
  0x71   :  { %1748 = vmatpush3.bf16.msra.mxu1 %v1886_v1  ;;  %1727 = vmatprep.subr.bf16.mxu0 %v1887_v2 }
  0x72   :  { %1749 = vmatprep.subr.bf16.mxu1 %v1888_v3 }
  0x74   :  { %1728 = vmatpush3.bf16.msra.mxu0 %v1889_v4 }
  0x75   :  { %1750 = vmatpush3.bf16.msra.mxu1 %v1890_v5  ;;  %1729 = vmatprep.subr.bf16.mxu0 %v1891_v6 }
  0x76   :  { %1751 = vmatprep.subr.bf16.mxu1 %v1892_v7 }
  0x78   :  { %1730 = vmatpush3.bf16.msra.mxu0 %v1893_v8 }
  0x79   :  { %1752 = vmatpush3.bf16.msra.mxu1 %v1894_v9  ;;  %1731 = vmatprep.subr.bf16.mxu0 %v1895_v10 }
  0x7a   :  { %1753 = vmatprep.subr.bf16.mxu1 %v1896_v11 }
  0x7c   :  { %1732 = vmatpush3.bf16.msra.mxu0 %v1897_v12 }
  0x7d   :  { %1754 = vmatpush3.bf16.msra.mxu1 %v1898_v13  ;;  %1733 = vmatprep.subr.bf16.mxu0 %v1899_v14 }
  0x7e   :  { %1755 = vmatprep.subr.bf16.mxu1 %v1900_v15 }
  0x80   :  { %1734 = vmatpush3.bf16.msra.mxu0 %v1901_v16 }
  0x81   :  { %1756 = vmatpush3.bf16.msra.mxu1 %v1902_v17 }
  0x83   :  { %1383 = vmatmul.mubr.bf16.vlgmr.msra.gmra.mxu0 %v1454_v20 }
  0x84   :  { %1423 = vmatmul.mubr.bf16.vlgmr.msra.gmra.mxu1 %v1456_v22 }
  0xe3   :  { %v1603_v24 = vpop.f32.mrf.mxu0 }
  0xe4   :  { %v1625_v25 = vpop.f32.mrf.mxu1 }
  0xe5   :  { %v1604_v27 = vpop.f32.mrf.mxu0 }
  0xe6   :  { %v1626_v28 = vpop.f32.mrf.mxu1  ;;  %v1605_v29 = vadd.f32 %v1604_v27, %v1603_v24 }
  0xe7   :  { %v1627_v30 = vadd.f32 %v1626_v28, %v1625_v25  ;;  %v1606_v31 = vpop.f32.mrf.mxu0 }
  0xe8   :  { %v1628_v32 = vpop.f32.mrf.mxu1  ;;  %v1145_v33 = vadd.f32 %v1605_v29, %v1441_v26 }
  0xe9   :  { %v1607_v34 = vpop.f32.mrf.mxu0 }
  0xea   :  { %v1629_v35 = vpop.f32.mrf.mxu1  ;;  %v1185_v36 = vadd.f32 %v1627_v30, %v1145_v33 }
 0x103   :  { %v1647_v37 = vpop.f32.mrf.mxu0 }
 0x104   :  { %v1669_v38 = vpop.f32.mrf.mxu1 }
 0x105   :  { %v1648_v39 = vpop.f32.mrf.mxu0 }
 0x106   :  { %v1670_v40 = vpop.f32.mrf.mxu1  ;;  %v1649_v53 = vadd.f32 %v1648_v39, %v1647_v37 }
 0x107   :  { %v1650_v41 = vpop.f32.mrf.mxu0  ;;  %v1671_v55 = vadd.f32 %v1670_v40, %v1669_v38 }
 0x108   :  { %v1672_v42 = vpop.f32.mrf.mxu1  ;;  %v1225_v54 = vadd.f32 %v1649_v53, %v1185_v36 }
 0x109   :  { %v1651_v43 = vpop.f32.mrf.mxu0 }
 0x10a   :  { %v1673_v44 = vpop.f32.mrf.mxu1  ;;  %v1265_v57 = vadd.f32 %v1671_v55, %v1225_v54 }
 0x123   :  { %v1691_v45 = vpop.f32.mrf.mxu0 }
 0x124   :  { %v1713_v46 = vpop.f32.mrf.mxu1 }
 0x125   :  { %v1692_v47 = vpop.f32.mrf.mxu0 }
 0x126   :  { %v1714_v48 = vpop.f32.mrf.mxu1  ;;  %v1693_v56 = vadd.f32 %v1692_v47, %v1691_v45 }
 0x127   :  { %v1694_v49 = vpop.f32.mrf.mxu0  ;;  %v1715_v59 = vadd.f32 %v1714_v48, %v1713_v46 }
 0x128   :  { %v1716_v50 = vpop.f32.mrf.mxu1  ;;  %v1305_v58 = vadd.f32 %v1693_v56, %v1265_v57 }
 0x129   :  { %v1695_v51 = vpop.f32.mrf.mxu0 }
 0x12a   :  { %v1717_v52 = vpop.f32.mrf.mxu1  ;;  %v1345_v63 = vadd.f32 %v1715_v59, %v1305_v58 }
 0x143   :  { %v1735_v60 = vpop.f32.mrf.mxu0 }
 0x144   :  { %v1757_v61 = vpop.f32.mrf.mxu1 }
 0x145   :  { %v1736_v62 = vpop.f32.mrf.mxu0 }
 0x146   :  { %v1737_v0 = vadd.f32 %v1736_v62, %v1735_v60  ;;  %v1758_v1 = vpop.f32.mrf.mxu1 }
 0x147   :  { %v1738_v2 = vpop.f32.mrf.mxu0  ;;  %v1759_v4 = vadd.f32 %v1758_v1, %v1757_v61 }
 0x148   :  { %v1385_v3 = vadd.f32 %v1737_v0, %v1345_v63  ;;  %v1760_v5 = vpop.f32.mrf.mxu1 }
 0x149   :  { %v1739_v6 = vpop.f32.mrf.mxu0 }
 0x14a   :  { %v1425_v7 = vadd.f32 %v1759_v4, %v1385_v3  ;;  %v1761_v8 = vpop.f32.mrf.mxu1 }
 0x14c   :  { %v1586_v9 = vmul.f32 -1.442695, %v1425_v7 }
 0x14e   :  { %1907 = vpow2.f32 %v1586_v9 }
 0x15b   :  { %v1908_v10 = vpop.eup %1907 }
 0x15c   :  { %v1433_v11 = vadd.f32 1.0, %v1908_v10 }
 0x15e   :  { %1909 = vrcp.f32 %v1433_v11 }
 0x16b   :  { %v1910_v12 = vpop.eup %1909 }
 0x16c   :  { %1436 = vst [vmem:[%s2348_s3] sm:$0xff] %v1910_v12 }

</bundles_post_ra>
